<compile_context>
chip_gen: v5e
topology: v5e:2x2
jax: 0.10.0
libtpu: 0.0.40
codegen_flags: <defaults>
</compile_context>

<pallas_src>
import functools

import jax
import jax.numpy as jnp
import numpy as np
from jax.experimental import pallas as pl
from jax.experimental.pallas import tpu as pltpu


# ----------------------------------------------------------------------------
# VMEM / tile sizing helpers
# ----------------------------------------------------------------------------
def _vmem_limit_bytes():
    """Scoped-VMEM limit: generous on v5e/v6e (128 MiB phys), headroom on v7x."""
    try:
        kind = jax.devices()[0].device_kind.lower()
    except Exception:
        kind = ""
    if "v5" in kind or "v6" in kind:
        return 96 * 1024 * 1024
    return 48 * 1024 * 1024          # v7x has only 64 MiB physical VMEM per TC


def _row_tile(n_rows, *, bytes_per_row, fixed_bytes, vmem_limit, max_tile=1024):
    """Largest row tile (multiple of 8, divisor of n_rows) within a VMEM budget."""
    budget = max(vmem_limit // 2 - fixed_bytes, 8 * bytes_per_row)
    cap = int(min(max_tile, max(8, budget // bytes_per_row)))
    if n_rows <= cap:
        return n_rows
    for t in range(cap - cap % 8, 7, -8):
        if n_rows % t == 0:
            return t
    return n_rows                     # pathological row count: one full block


# ----------------------------------------------------------------------------
# Kernel 1: fused input projections + elementwise prep
#   z = x @ [Win_r | Win_i | Wlam | Wgate_r | Wgate_i]   (one bf16 MXU matmul)
# ----------------------------------------------------------------------------
def proj_kernel(x_ref, w_ref, b_ref, cos_ref, sin_ref,
                ir_ref, ii_ref, gr_ref, gi_ref, gater_ref, gatei_ref,
                *, d, lower_bound):
    x = x_ref[...].astype(jnp.bfloat16)                      # bf16 MXU operand
    z = jnp.dot(x, w_ref[...], preferred_element_type=jnp.float32) + b_ref[...]
    # TODO(synk): pad the five weight segments to 128-lane boundaries when
    # d % 128 != 0 so these column slices stay relayout-free.
    sr = jax.nn.silu(z[:, 0:d])                   # input_proj real (even cols)
    si = jax.nn.silu(z[:, d:2 * d])               # input_proj imag (odd cols)
    lam = lower_bound + (1.0 - lower_bound) * jax.nn.sigmoid(z[:, 2 * d:3 * d])
    gater_ref[...] = jax.nn.silu(z[:, 3 * d:4 * d])
    gatei_ref[...] = jax.nn.silu(z[:, 4 * d:5 * d])
    gr_ref[...] = lam * cos_ref[...]
    gi_ref[...] = lam * sin_ref[...]
    one_minus = 1.0 - lam
    ir_ref[...] = one_minus * sr
    ii_ref[...] = one_minus * si


def fused_proj(x_flat, p, *, lower_bound, vmem_limit):
    n, d = x_flat.shape
    weight_bytes = 2 * (d * 5 * d * 2)            # double-buffered bf16 weight
    tn = _row_tile(n, bytes_per_row=2 * 7 * d * 4,
                   fixed_bytes=weight_bytes, vmem_limit=vmem_limit)
    row = lambda i: (i, 0)
    full = lambda i: (0, 0)
    kernel = functools.partial(proj_kernel, d=d, lower_bound=lower_bound)
    out_row = pl.BlockSpec((tn, d), row)
    return pl.pallas_call(
        kernel,
        out_shape=tuple(jax.ShapeDtypeStruct((n, d), jnp.float32)
                        for _ in range(6)),
        grid_spec=pltpu.PrefetchScalarGridSpec(
            num_scalar_prefetch=0, grid=(n // tn,),
            in_specs=[
                pl.BlockSpec((tn, d), row),
                pl.BlockSpec((d, 5 * d), full),
                pl.BlockSpec((1, 5 * d), full),
                pl.BlockSpec((1, d), full),
                pl.BlockSpec((1, d), full),
            ],
            out_specs=[out_row] * 6),
        compiler_params=pltpu.CompilerParams(
            dimension_semantics=("parallel",),
            vmem_limit_bytes=vmem_limit),
    )(x_flat, p["w_proj5"], p["b_proj5"], p["cos_theta2"], p["sin_theta2"])


# ----------------------------------------------------------------------------
# Kernel 2a: recurrence with the time axis leading (H direction).
# Operands shaped (T, S, L): per-timestep slabs are sublane-dense (S=8, L=M/8).
# ----------------------------------------------------------------------------
def scan_lead_kernel(ir_ref, ii_ref, gr_ref, gi_ref, hr_ref, hi_ref, sr, si,
                     *, tc):
    @pl.when(pl.program_id(0) == 0)
    def _():
        sr[...] = jnp.zeros_like(sr)
        si[...] = jnp.zeros_like(si)

    hr_p = sr[...]
    hi_p = si[...]
    for t in range(tc):                       # small static unroll per chunk
        g_r = gr_ref[t]
        g_i = gi_ref[t]
        hr_n = g_r * hr_p - g_i * hi_p + ir_ref[t]
        hi_n = g_r * hi_p + g_i * hr_p + ii_ref[t]
        hr_ref[t] = hr_n                      # dense (S, L) slab store
        hi_ref[t] = hi_n
        hr_p, hi_p = hr_n, hi_n
    sr[...] = hr_p
    si[...] = hi_p


def hgru_scan_leading(ir, ii, gr, gi, *, vmem_limit, max_chunk=32):
    t, s, l = ir.shape
    m = s * l
    # chunk bounded by VMEM (12 double-buffered (tc, S, L) f32 blocks) and by
    # max_chunk; must divide T (no full-unroll fallback for awkward T).
    cap = max(1, min(max_chunk, (vmem_limit // 3) // (12 * m * 4)))
    tc = 1
    for c in range(1, min(t, cap) + 1):
        if t % c == 0:
            tc = c
    # TODO(synk): on v7x (2 TensorCores) add a leading "parallel" grid axis
    # that splits the lane dim to shard the scan across the two cores.
    blk = pl.BlockSpec((tc, s, l), lambda c: (c, 0, 0))
    kernel = functools.partial(scan_lead_kernel, tc=tc)
    return pl.pallas_call(
        kernel,
        out_shape=(jax.ShapeDtypeStruct((t, s, l), jnp.float32),
                   jax.ShapeDtypeStruct((t, s, l), jnp.float32)),
        grid_spec=pltpu.PrefetchScalarGridSpec(
            num_scalar_prefetch=0, grid=(t // tc,),
            in_specs=[blk] * 4,
            out_specs=[blk] * 2,
            scratch_shapes=[pltpu.VMEM((s, l), jnp.float32),
                            pltpu.VMEM((s, l), jnp.float32)]),
        compiler_params=pltpu.CompilerParams(
            dimension_semantics=("arbitrary",),
            vmem_limit_bytes=vmem_limit),
    )(ir, ii, gr, gi)


# ----------------------------------------------------------------------------
# Kernel 2b: recurrence with the time axis in the MIDDLE (W direction), run
# directly on the (H, W, B*D) view.  The squeezed middle dim makes each grid
# step a dense (H, B*D) slab; no HBM transposes are materialized.
# ----------------------------------------------------------------------------
def scan_mid_kernel(ir_ref, ii_ref, gr_ref, gi_ref, hr_ref, hi_ref, sr, si):
    @pl.when(pl.program_id(0) == 0)
    def _():
        sr[...] = jnp.zeros_like(sr)
        si[...] = jnp.zeros_like(si)

    g_r = gr_ref[...]
    g_i = gi_ref[...]
    hr_p = sr[...]
    hi_p = si[...]
    hr_n = g_r * hr_p - g_i * hi_p + ir_ref[...]
    hi_n = g_r * hi_p + g_i * hr_p + ii_ref[...]
    hr_ref[...] = hr_n
    hi_ref[...] = hi_n
    sr[...] = hr_n
    si[...] = hi_n


def hgru_scan_middle(ir, ii, gr, gi, *, vmem_limit):
    h, w, m = ir.shape
    blk = pl.BlockSpec((h, None, m), lambda c: (0, c, 0))   # squeezed time dim
    return pl.pallas_call(
        scan_mid_kernel,
        out_shape=(jax.ShapeDtypeStruct((h, w, m), jnp.float32),
                   jax.ShapeDtypeStruct((h, w, m), jnp.float32)),
        grid_spec=pltpu.PrefetchScalarGridSpec(
            num_scalar_prefetch=0, grid=(w,),
            in_specs=[blk] * 4,
            out_specs=[blk] * 2,
            scratch_shapes=[pltpu.VMEM((h, m), jnp.float32),
                            pltpu.VMEM((h, m), jnp.float32)]),
        compiler_params=pltpu.CompilerParams(
            dimension_semantics=("arbitrary",),
            vmem_limit_bytes=vmem_limit),
    )(ir, ii, gr, gi)


# ----------------------------------------------------------------------------
# Kernel 3: (hr1+hr2, hi1+hi2) -> LayerNorm(concat) * gate -> out_proj
# (out_proj as two K-split bf16 dots; no lane-axis concatenate)
# ----------------------------------------------------------------------------
def out_kernel(hr1_ref, hr2_ref, hi1_ref, hi2_ref, gater_ref, gatei_ref,
               lnwr_ref, lnwi_ref, lnbr_ref, lnbi_ref,
               wor_ref, woi_ref, bo_ref, o_ref, *, d, eps):
    hr = hr1_ref[...] + hr2_ref[...]
    hi = hi1_ref[...] + hi2_ref[...]
    inv_n = 1.0 / (2.0 * d)
    mean = (jnp.sum(hr, axis=-1, keepdims=True)
            + jnp.sum(hi, axis=-1, keepdims=True)) * inv_n
    dr = hr - mean
    di = hi - mean
    var = (jnp.sum(dr * dr, axis=-1, keepdims=True)
           + jnp.sum(di * di, axis=-1, keepdims=True)) * inv_n
    inv = jax.lax.rsqrt(var + eps)
    fr = (dr * inv * lnwr_ref[...] + lnbr_ref[...]) * gater_ref[...]
    fi = (di * inv * lnwi_ref[...] + lnbi_ref[...]) * gatei_ref[...]
    acc = jnp.dot(fr.astype(jnp.bfloat16), wor_ref[...],
                  preferred_element_type=jnp.float32)
    acc = acc + jnp.dot(fi.astype(jnp.bfloat16), woi_ref[...],
                        preferred_element_type=jnp.float32)
    o_ref[...] = acc + bo_ref[...]


def fused_out(hr1, hr2, hi1, hi2, gate_r, gate_i, p, *, vmem_limit):
    n, d = hr1.shape
    weight_bytes = 2 * (2 * d * d * 2)            # two double-buffered bf16 W
    tn = _row_tile(n, bytes_per_row=2 * 8 * d * 4,
                   fixed_bytes=weight_bytes, vmem_limit=vmem_limit)
    row = lambda i: (i, 0)
    full = lambda i: (0, 0)
    kernel = functools.partial(out_kernel, d=d, eps=1e-5)
    row_spec = pl.BlockSpec((tn, d), row)
    vec_spec = pl.BlockSpec((1, d), full)
    return pl.pallas_call(
        kernel,
        out_shape=jax.ShapeDtypeStruct((n, d), jnp.float32),
        grid_spec=pltpu.PrefetchScalarGridSpec(
            num_scalar_prefetch=0, grid=(n // tn,),
            in_specs=[row_spec] * 6
                     + [vec_spec] * 4
                     + [pl.BlockSpec((d, d), full), pl.BlockSpec((d, d), full),
                        vec_spec],
            out_specs=row_spec),
        compiler_params=pltpu.CompilerParams(
            dimension_semantics=("parallel",),
            vmem_limit_bytes=vmem_limit),
    )(hr1, hr2, hi1, hi2, gate_r, gate_i,
      p["ln_w_r"], p["ln_w_i"], p["ln_b_r"], p["ln_b_i"],
      p["w_out_r"], p["w_out_i"], p["b_out2"])


# ----------------------------------------------------------------------------
# Parameter init (deterministic, synthetic) + forward wrapper
# ----------------------------------------------------------------------------
def init_params(key, d):
    ks = jax.random.split(key, 10)
    u = lambda k, shape, fan_in: jax.random.uniform(
        k, shape, jnp.float32, -1.0 / np.sqrt(fan_in), 1.0 / np.sqrt(fan_in))
    # Matmul weights are round-tripped through bf16 so the kernels can store
    # them in bf16 (half the weight HBM/VMEM traffic) while the f32 reference
    # uses numerically identical values.
    rt = lambda a: a.astype(jnp.bfloat16).astype(jnp.float32)
    p = {}
    p["w_in_t"] = rt(u(ks[0], (d, 2 * d), d))        # Linear weights: (in, out)
    p["b_in"] = u(ks[1], (2 * d,), d)
    p["w_lambda_t"] = rt(u(ks[2], (d, d), d))
    p["b_lambda"] = u(ks[3], (d,), d)
    p["w_gate_t"] = rt(u(ks[4], (d, 2 * d), d))
    p["b_gate"] = u(ks[5], (2 * d,), d)
    p["w_out_t"] = rt(u(ks[6], (2 * d, d), 2 * d))
    p["b_out"] = u(ks[7], (d,), 2 * d)
    p["ln_w"] = 1.0 + 0.1 * jax.random.normal(ks[8], (2 * d,), jnp.float32)
    p["ln_b"] = 0.1 * jax.random.normal(ks[9], (2 * d,), jnp.float32)
    p["theta"] = (10000.0 ** (-2.0 / d * jnp.arange(d, dtype=jnp.float32)))
    # ---- kernel-friendly derived views (precomputed once at init) ----
    w_in_r = p["w_in_t"][:, 0::2]                    # even output cols -> real
    w_in_i = p["w_in_t"][:, 1::2]                    # odd  output cols -> imag
    b_in_r = p["b_in"][0::2]
    b_in_i = p["b_in"][1::2]
    # fused projection weight: [Win_r | Win_i | Wlambda | Wgate] as bf16
    p["w_proj5"] = jnp.concatenate(
        [w_in_r, w_in_i, p["w_lambda_t"], p["w_gate_t"]],
        axis=1).astype(jnp.bfloat16)                               # (d, 5d)
    p["b_proj5"] = jnp.concatenate(
        [b_in_r, b_in_i, p["b_lambda"], p["b_gate"]]).reshape(1, 5 * d)
    p["cos_theta2"] = jnp.cos(p["theta"]).reshape(1, d)
    p["sin_theta2"] = jnp.sin(p["theta"]).reshape(1, d)
    p["ln_w_r"] = p["ln_w"][:d].reshape(1, d)
    p["ln_w_i"] = p["ln_w"][d:].reshape(1, d)
    p["ln_b_r"] = p["ln_b"][:d].reshape(1, d)
    p["ln_b_i"] = p["ln_b"][d:].reshape(1, d)
    p["w_out_r"] = p["w_out_t"][:d, :].astype(jnp.bfloat16)        # (d, d)
    p["w_out_i"] = p["w_out_t"][d:, :].astype(jnp.bfloat16)        # (d, d)
    p["b_out2"] = p["b_out"].reshape(1, d)
    return p


def hgru2d_forward(x, p, lower_bound=0.0):
    h, w, b, d = x.shape
    n = h * w * b
    vmem_limit = _vmem_limit_bytes()

    x_flat = x.reshape(n, d)
    ir, ii, gr, gi, gate_r, gate_i = fused_proj(
        x_flat, p, lower_bound=lower_bound, vmem_limit=vmem_limit)

    # direction 1: scan over H, lanes = (W*B*D) viewed as (H, 8, M/8)
    # (free contiguous reshape, sublane-dense per-timestep slabs)
    m1 = w * b * d
    s1 = 8 if m1 % 8 == 0 else 1
    to1 = lambda a: a.reshape(h, s1, m1 // s1)
    hr1, hi1 = hgru_scan_leading(to1(ir), to1(ii), to1(gr), to1(gi),
                                 vmem_limit=vmem_limit)

    # direction 2: scan over W directly on the (H, W, B*D) view -> no
    # materialized HBM transposes in either direction; outputs land already
    # in (H, W, B, D) order.
    to2 = lambda a: a.reshape(h, w, b * d)
    try:
        hr2, hi2 = hgru_scan_middle(to2(ir), to2(ii), to2(gr), to2(gi),
                                    vmem_limit=vmem_limit)
        hr2 = hr2.reshape(n, d)
        hi2 = hi2.reshape(n, d)
    except Exception:
        # Fallback if the strided middle-axis window is rejected by this
        # backend: materialize the transpose and reuse the leading-axis scan.
        m2 = h * b * d
        s2 = 8 if m2 % 8 == 0 else 1
        tr = lambda a: a.reshape(h, w, b, d).transpose(1, 0, 2, 3).reshape(
            w, s2, m2 // s2)
        hr2t, hi2t = hgru_scan_leading(tr(ir), tr(ii), tr(gr), tr(gi),
                                       vmem_limit=vmem_limit)
        back = lambda a: a.reshape(w, h, b, d).transpose(1, 0, 2, 3).reshape(n, d)
        hr2, hi2 = back(hr2t), back(hi2t)

    out = fused_out(hr1.reshape(n, d), hr2, hi1.reshape(n, d), hi2,
                    gate_r, gate_i, p, vmem_limit=vmem_limit)
    return out.reshape(h, w, b, d)


# ----------------------------------------------------------------------------
# Pure-JAX reference (mirrors the PyTorch forward) for verification
# ----------------------------------------------------------------------------
def reference_forward(x, p, lower_bound=0.0):
    h, w, b, d = x.shape
    inp = jax.nn.silu(x @ p["w_in_t"] + p["b_in"])
    gate = jax.nn.silu(x @ p["w_gate_t"] + p["b_gate"])
    lam = lower_bound + (1.0 - lower_bound) * jax.nn.sigmoid(
        x @ p["w_lambda_t"] + p["b_lambda"])
    gamma_r = lam * jnp.cos(p["theta"])
    gamma_i = lam * jnp.sin(p["theta"])
    inp2 = inp.reshape(h, w, b, d, 2)
    in_r = (1.0 - lam) * inp2[..., 0]
    in_i = (1.0 - lam) * inp2[..., 1]

    def scan_seq(ir, ii, gr, gi):
        def step(carry, xs):
            hr, hi = carry
            ir_t, ii_t, gr_t, gi_t = xs
            nhr = gr_t * hr - gi_t * hi + ir_t
            nhi = gr_t * hi + gi_t * hr + ii_t
            return (nhr, nhi), (nhr, nhi)
        init = (jnp.zeros_like(ir[0]), jnp.zeros_like(ii[0]))
        _, (hr, hi) = jax.lax.scan(step, init, (ir, ii, gr, gi))
        return hr, hi

    f1 = lambda a: a.reshape(h, w * b, d)
    f2 = lambda a: a.transpose(1, 0, 2, 3).reshape(w, h * b, d)
    hr1, hi1 = scan_seq(f1(in_r), f1(in_i), f1(gamma_r), f1(gamma_i))
    hr2, hi2 = scan_seq(f2(in_r), f2(in_i), f2(gamma_r), f2(gamma_i))
    hr = hr1.reshape(h, w, b, d) + hr2.reshape(w, h, b, d).transpose(1, 0, 2, 3)
    hi = hi1.reshape(h, w, b, d) + hi2.reshape(w, h, b, d).transpose(1, 0, 2, 3)

    feat = jnp.concatenate([hr, hi], axis=-1)
    mean = feat.mean(-1, keepdims=True)
    var = ((feat - mean) ** 2).mean(-1, keepdims=True)
    feat = (feat - mean) / jnp.sqrt(var + 1e-5) * p["ln_w"] + p["ln_b"]
    return (feat * gate) @ p["w_out_t"] + p["b_out"]


# ----------------------------------------------------------------------------
if __name__ == "__main__":
    H, W, B, D = 8, 8, 2, 32
    key = jax.random.PRNGKey(0)
    kx, kp = jax.random.split(key)
    x = jax.random.normal(kx, (H, W, B, D), jnp.float32)
    params = init_params(kp, D)

    out = hgru2d_forward(x, params, lower_bound=0.0)
    out = jax.block_until_ready(out)

    ref = jax.block_until_ready(reference_forward(x, params, lower_bound=0.0))
    # bf16 MXU operands (activation casts) account for the slightly relaxed atol.
    np.testing.assert_allclose(np.asarray(out), np.asarray(ref),
                               rtol=1e-2, atol=2e-2)
    assert out.shape == (H, W, B, D)
    print("KERNEL_OK")
</pallas_src>

<mosaic_0001>
module attributes {stable_mosaic.version = 11 : i64} {
  func.func @proj_kernel(%arg0: i32, %arg1: memref<128x32xf32, #tpu.memory_space<vmem>>, %arg2: memref<32x160xbf16, #tpu.memory_space<vmem>>, %arg3: memref<1x160xf32, #tpu.memory_space<vmem>>, %arg4: memref<1x32xf32, #tpu.memory_space<vmem>>, %arg5: memref<1x32xf32, #tpu.memory_space<vmem>>, %arg6: memref<128x32xf32, #tpu.memory_space<vmem>>, %arg7: memref<128x32xf32, #tpu.memory_space<vmem>>, %arg8: memref<128x32xf32, #tpu.memory_space<vmem>>, %arg9: memref<128x32xf32, #tpu.memory_space<vmem>>, %arg10: memref<128x32xf32, #tpu.memory_space<vmem>>, %arg11: memref<128x32xf32, #tpu.memory_space<vmem>>) attributes {dimension_semantics = [#tpu.dimension_semantics<parallel>], iteration_bounds = array<i64: 1>, scalar_prefetch = 0 : i64, scratch_operands = 0 : i64, tpu.core_type = #tpu.core_type<tc>, window_params = [{transform_indices = @transform_0, window_bounds = array<i64: 128, 32>}, {pipeline_mode = #tpu.pipeline_mode<synchronous>, transform_indices = @transform_1, window_bounds = array<i64: 32, 160>}, {pipeline_mode = #tpu.pipeline_mode<synchronous>, transform_indices = @transform_2, window_bounds = array<i64: 1, 160>}, {pipeline_mode = #tpu.pipeline_mode<synchronous>, transform_indices = @transform_3, window_bounds = array<i64: 1, 32>}, {pipeline_mode = #tpu.pipeline_mode<synchronous>, transform_indices = @transform_4, window_bounds = array<i64: 1, 32>}, {transform_indices = @transform_5, window_bounds = array<i64: 128, 32>}, {transform_indices = @transform_6, window_bounds = array<i64: 128, 32>}, {transform_indices = @transform_7, window_bounds = array<i64: 128, 32>}, {transform_indices = @transform_8, window_bounds = array<i64: 128, 32>}, {transform_indices = @transform_9, window_bounds = array<i64: 128, 32>}, {transform_indices = @transform_10, window_bounds = array<i64: 128, 32>}]} {
    %c0 = arith.constant 0 : index
    %c0_0 = arith.constant 0 : index
    %0 = vector.load %arg1[%c0, %c0_0] : memref<128x32xf32, #tpu.memory_space<vmem>>, vector<128x32xf32>
    %1 = arith.truncf %0 : vector<128x32xf32> to vector<128x32xbf16>
    %c0_1 = arith.constant 0 : index
    %c0_2 = arith.constant 0 : index
    %2 = vector.load %arg2[%c0_1, %c0_2] : memref<32x160xbf16, #tpu.memory_space<vmem>>, vector<32x160xbf16>
    %cst = arith.constant dense<0.000000e+00> : vector<128x160xf32>
    %3 = tpu.matmul %1, %2, %cst {dimension_numbers = #tpu.dot_dimension_numbers<[1], [0], [0], [1], [0, 0, 1, 1], [], []>} : vector<128x32xbf16>, vector<32x160xbf16>, vector<128x160xf32> -> vector<128x160xf32>
    %c0_3 = arith.constant 0 : index
    %c0_4 = arith.constant 0 : index
    %4 = vector.load %arg3[%c0_3, %c0_4] : memref<1x160xf32, #tpu.memory_space<vmem>>, vector<1x160xf32>
    %5 = vector.broadcast %4 : vector<1x160xf32> to vector<128x160xf32>
    %6 = arith.addf %3, %5 : vector<128x160xf32>
    %7 = vector.extract_strided_slice %6 {offsets = [0, 0], sizes = [128, 32], strides = [1, 1]} : vector<128x160xf32> to vector<128x32xf32>
    %8 = arith.negf %7 : vector<128x32xf32>
    %9 = math.exp %8 : vector<128x32xf32>
    %cst_5 = arith.constant 1.000000e+00 : f32
    %10 = vector.broadcast %cst_5 : f32 to vector<128x32xf32>
    %11 = arith.addf %10, %9 : vector<128x32xf32>
    %12 = arith.divf %10, %11 : vector<128x32xf32>
    %13 = arith.mulf %7, %12 : vector<128x32xf32>
    %14 = vector.extract_strided_slice %6 {offsets = [0, 32], sizes = [128, 32], strides = [1, 1]} : vector<128x160xf32> to vector<128x32xf32>
    %15 = arith.negf %14 : vector<128x32xf32>
    %16 = math.exp %15 : vector<128x32xf32>
    %cst_6 = arith.constant 1.000000e+00 : f32
    %17 = vector.broadcast %cst_6 : f32 to vector<128x32xf32>
    %18 = arith.addf %17, %16 : vector<128x32xf32>
    %19 = arith.divf %17, %18 : vector<128x32xf32>
    %20 = arith.mulf %14, %19 : vector<128x32xf32>
    %21 = vector.extract_strided_slice %6 {offsets = [0, 64], sizes = [128, 32], strides = [1, 1]} : vector<128x160xf32> to vector<128x32xf32>
    %22 = arith.negf %21 : vector<128x32xf32>
    %23 = math.exp %22 : vector<128x32xf32>
    %cst_7 = arith.constant 1.000000e+00 : f32
    %24 = vector.broadcast %cst_7 : f32 to vector<128x32xf32>
    %25 = arith.addf %24, %23 : vector<128x32xf32>
    %26 = arith.divf %24, %25 : vector<128x32xf32>
    %cst_8 = arith.constant 1.000000e+00 : f32
    %27 = vector.broadcast %cst_8 : f32 to vector<128x32xf32>
    %28 = arith.mulf %27, %26 : vector<128x32xf32>
    %cst_9 = arith.constant 0.000000e+00 : f32
    %29 = vector.broadcast %cst_9 : f32 to vector<128x32xf32>
    %30 = arith.addf %29, %28 : vector<128x32xf32>
    %31 = vector.extract_strided_slice %6 {offsets = [0, 96], sizes = [128, 32], strides = [1, 1]} : vector<128x160xf32> to vector<128x32xf32>
    %32 = arith.negf %31 : vector<128x32xf32>
    %33 = math.exp %32 : vector<128x32xf32>
    %cst_10 = arith.constant 1.000000e+00 : f32
    %34 = vector.broadcast %cst_10 : f32 to vector<128x32xf32>
    %35 = arith.addf %34, %33 : vector<128x32xf32>
    %36 = arith.divf %34, %35 : vector<128x32xf32>
    %37 = arith.mulf %31, %36 : vector<128x32xf32>
    %c0_11 = arith.constant 0 : index
    %c0_12 = arith.constant 0 : index
    %38 = vector.load %arg10[%c0_11, %c0_12] : memref<128x32xf32, #tpu.memory_space<vmem>>, vector<128x32xf32>
    tpu.vector_store %arg10[%c0_11, %c0_12], %37 {strides = array<i32>} : memref<128x32xf32, #tpu.memory_space<vmem>>, vector<128x32xf32>,
    %39 = vector.extract_strided_slice %6 {offsets = [0, 128], sizes = [128, 32], strides = [1, 1]} : vector<128x160xf32> to vector<128x32xf32>
    %40 = arith.negf %39 : vector<128x32xf32>
    %41 = math.exp %40 : vector<128x32xf32>
    %cst_13 = arith.constant 1.000000e+00 : f32
    %42 = vector.broadcast %cst_13 : f32 to vector<128x32xf32>
    %43 = arith.addf %42, %41 : vector<128x32xf32>
    %44 = arith.divf %42, %43 : vector<128x32xf32>
    %45 = arith.mulf %39, %44 : vector<128x32xf32>
    %c0_14 = arith.constant 0 : index
    %c0_15 = arith.constant 0 : index
    %46 = vector.load %arg11[%c0_14, %c0_15] : memref<128x32xf32, #tpu.memory_space<vmem>>, vector<128x32xf32>
    tpu.vector_store %arg11[%c0_14, %c0_15], %45 {strides = array<i32>} : memref<128x32xf32, #tpu.memory_space<vmem>>, vector<128x32xf32>,
    %c0_16 = arith.constant 0 : index
    %c0_17 = arith.constant 0 : index
    %47 = vector.load %arg4[%c0_16, %c0_17] : memref<1x32xf32, #tpu.memory_space<vmem>>, vector<1x32xf32>
    %48 = vector.broadcast %47 : vector<1x32xf32> to vector<128x32xf32>
    %49 = arith.mulf %30, %48 : vector<128x32xf32>
    %c0_18 = arith.constant 0 : index
    %c0_19 = arith.constant 0 : index
    %50 = vector.load %arg8[%c0_18, %c0_19] : memref<128x32xf32, #tpu.memory_space<vmem>>, vector<128x32xf32>
    tpu.vector_store %arg8[%c0_18, %c0_19], %49 {strides = array<i32>} : memref<128x32xf32, #tpu.memory_space<vmem>>, vector<128x32xf32>,
    %c0_20 = arith.constant 0 : index
    %c0_21 = arith.constant 0 : index
    %51 = vector.load %arg5[%c0_20, %c0_21] : memref<1x32xf32, #tpu.memory_space<vmem>>, vector<1x32xf32>
    %52 = vector.broadcast %51 : vector<1x32xf32> to vector<128x32xf32>
    %53 = arith.mulf %30, %52 : vector<128x32xf32>
    %c0_22 = arith.constant 0 : index
    %c0_23 = arith.constant 0 : index
    %54 = vector.load %arg9[%c0_22, %c0_23] : memref<128x32xf32, #tpu.memory_space<vmem>>, vector<128x32xf32>
    tpu.vector_store %arg9[%c0_22, %c0_23], %53 {strides = array<i32>} : memref<128x32xf32, #tpu.memory_space<vmem>>, vector<128x32xf32>,
    %cst_24 = arith.constant 1.000000e+00 : f32
    %55 = vector.broadcast %cst_24 : f32 to vector<128x32xf32>
    %56 = arith.subf %55, %30 : vector<128x32xf32>
    %57 = arith.mulf %56, %13 : vector<128x32xf32>
    %c0_25 = arith.constant 0 : index
    %c0_26 = arith.constant 0 : index
    %58 = vector.load %arg6[%c0_25, %c0_26] : memref<128x32xf32, #tpu.memory_space<vmem>>, vector<128x32xf32>
    tpu.vector_store %arg6[%c0_25, %c0_26], %57 {strides = array<i32>} : memref<128x32xf32, #tpu.memory_space<vmem>>, vector<128x32xf32>,
    %59 = arith.mulf %56, %20 : vector<128x32xf32>
    %c0_27 = arith.constant 0 : index
    %c0_28 = arith.constant 0 : index
    %60 = vector.load %arg7[%c0_27, %c0_28] : memref<128x32xf32, #tpu.memory_space<vmem>>, vector<128x32xf32>
    tpu.vector_store %arg7[%c0_27, %c0_28], %59 {strides = array<i32>} : memref<128x32xf32, #tpu.memory_space<vmem>>, vector<128x32xf32>,
    return
  }
  func.func @transform_0(%arg0: i32) -> (i32, i32) {
    %c0_i32 = arith.constant 0 : i32
    %c0_i32_0 = arith.constant 0 : i32
    return %arg0, %c0_i32 : i32, i32
  }
  func.func @transform_1(%arg0: i32) -> (i32, i32) {
    %c0_i32 = arith.constant 0 : i32
    %c0_i32_0 = arith.constant 0 : i32
    %c0_i32_1 = arith.constant 0 : i32
    return %c0_i32, %c0_i32_0 : i32, i32
  }
  func.func @transform_2(%arg0: i32) -> (i32, i32) {
    %c0_i32 = arith.constant 0 : i32
    %c0_i32_0 = arith.constant 0 : i32
    %c0_i32_1 = arith.constant 0 : i32
    return %c0_i32, %c0_i32_0 : i32, i32
  }
  func.func @transform_3(%arg0: i32) -> (i32, i32) {
    %c0_i32 = arith.constant 0 : i32
    %c0_i32_0 = arith.constant 0 : i32
    %c0_i32_1 = arith.constant 0 : i32
    return %c0_i32, %c0_i32_0 : i32, i32
  }
  func.func @transform_4(%arg0: i32) -> (i32, i32) {
    %c0_i32 = arith.constant 0 : i32
    %c0_i32_0 = arith.constant 0 : i32
    %c0_i32_1 = arith.constant 0 : i32
    return %c0_i32, %c0_i32_0 : i32, i32
  }
  func.func @transform_5(%arg0: i32) -> (i32, i32) {
    %c0_i32 = arith.constant 0 : i32
    %c0_i32_0 = arith.constant 0 : i32
    return %arg0, %c0_i32 : i32, i32
  }
  func.func @transform_6(%arg0: i32) -> (i32, i32) {
    %c0_i32 = arith.constant 0 : i32
    %c0_i32_0 = arith.constant 0 : i32
    return %arg0, %c0_i32 : i32, i32
  }
  func.func @transform_7(%arg0: i32) -> (i32, i32) {
    %c0_i32 = arith.constant 0 : i32
    %c0_i32_0 = arith.constant 0 : i32
    return %arg0, %c0_i32 : i32, i32
  }
  func.func @transform_8(%arg0: i32) -> (i32, i32) {
    %c0_i32 = arith.constant 0 : i32
    %c0_i32_0 = arith.constant 0 : i32
    return %arg0, %c0_i32 : i32, i32
  }
  func.func @transform_9(%arg0: i32) -> (i32, i32) {
    %c0_i32 = arith.constant 0 : i32
    %c0_i32_0 = arith.constant 0 : i32
    return %arg0, %c0_i32 : i32, i32
  }
  func.func @transform_10(%arg0: i32) -> (i32, i32) {
    %c0_i32 = arith.constant 0 : i32
    %c0_i32_0 = arith.constant 0 : i32
    return %arg0, %c0_i32 : i32, i32
  }
}

</mosaic_0001>

<bundles_post_ra>
// kernel: tpu_custom_call.1
= control target key start
LH: loop header
LB: loop body
LE: loop exit
PB: predicated region body
PF: predicated region fallthrough
CT: control target
= control target key end

     0   :  { %vm81_vm0 = vcmask 261120   ;;  %s1645_s13 = smov 64   ;;  %s3163_s1 = inlined_call_operand.vmem [shape: bf16[32,160], index: 1, kind: input, shape index: {}]   ;;  %s3164_s0 = inlined_call_operand.vmem [shape: f32[128,32], index: 0, kind: input, shape index: {}]   ;;  %s3165_s4 = inlined_call_operand.vmem [shape: f32[1,32], index: 4, kind: input, shape index: {}]   ;;  %s3166_s3 = inlined_call_operand.vmem [shape: f32[1,32], index: 3, kind: input, shape index: {}]   ;;  %s3167_s2 = inlined_call_operand.vmem [shape: f32[1,160], index: 2, kind: input, shape index: {}]   ;;  %s3168_s7 = inlined_call_operand.vmem [shape: f32[128,32], index: 7, kind: output, shape index: {2}]   ;;  %s3169_s9 = inlined_call_operand.vmem [shape: f32[128,32], index: 9, kind: output, shape index: {4}]   ;;  %s3170_s8 = inlined_call_operand.vmem [shape: f32[128,32], index: 8, kind: output, shape index: {3}]   ;;  %s3171_s5 = inlined_call_operand.vmem [shape: f32[128,32], index: 5, kind: output, shape index: {0}]   ;;  %s3172_s10 = inlined_call_operand.vmem [shape: f32[128,32], index: 10, kind: output, shape index: {5}]   ;;  %s3173_s6 = inlined_call_operand.vmem [shape: f32[128,32], index: 6, kind: output, shape index: {1}]  }
   0x1   :  { %v1450_v0 = vld [vmem:[%s3163_s1 + $0x10] sm:$0xf]  ;;  %v1507_v1 = vld [vmem:[%s3163_s1 + $0x14] sm:$0xf0]  ;;  %v1442_v2 = vld [vmem:[%s3163_s1] sm:$0xf] }
   0x2   :  { %v1451_v3 = vor.u32 %v1507_v1, %v1450_v0  ;;  %v1505_v4 = vld [vmem:[%s3163_s1 + $0x4] sm:$0xf0]  ;;  %v27_v5 = vld [vmem:[%s3164_s0] sm:$0xff]  ;;  %v29_v14 = vld [vmem:[%s3164_s0 + $0x10] sm:$0xff] }
   0x3   :  { %v1443_v6 = vor.u32 %v1505_v4, %v1442_v2  ;;  %v28_v7 = vld [vmem:[%s3164_s0 + $0x8] sm:$0xff]  ;;  %v35_v8 = vld [vmem:[%s3164_s0 + $0x40] sm:$0xff]  ;;  %v30_v15 = vld [vmem:[%s3164_s0 + $0x18] sm:$0xff] }
   0x4   :  { %112 = vmatpush.bf16.msra.mxu0 %v1451_v3  ;;  %1508 = vmatpush.bf16.msra.mxu2 %v1451_v3  ;;  %v36_v9 = vld [vmem:[%s3164_s0 + $0x48] sm:$0xff]  ;;  %v1726_v10 = vpack.c.bf16 %v28_v7, %v27_v5  ;;  %v1514_v12 = vld [vmem:[%s3165_s4] ss:$0 sm:$0xff]  ;;  %v37_v16 = vld [vmem:[%s3164_s0 + $0x50] sm:$0xff]  ;;  %v1754_v18 = vpack.c.bf16 %v30_v15, %v29_v14 }
   0x5   :  { %v1728_v11 = vpack.c.bf16 %v36_v9, %v35_v8  ;;  %v1515_v13 = vld [vmem:[%s3166_s3] ss:$0 sm:$0xff]  ;;  %1061 = vrot.lane.b32.xlu0 %v1514_v12, %s1645_s13  ;;  %v38_v17 = vld [vmem:[%s3164_s0 + $0x58] sm:$0xff]  ;;  %v32_v21 = vld [vmem:[%s3164_s0 + $0x28] sm:$0xff] }
   0x6   :  { %959 = vrot.lane.b32.xlu1 %v1515_v13, %s1645_s13  ;;  %v1756_v19 = vpack.c.bf16 %v38_v17, %v37_v16  ;;  %v31_v20 = vld [vmem:[%s3164_s0 + $0x20] sm:$0xff]  ;;  %v40_v23 = vld [vmem:[%s3164_s0 + $0x68] sm:$0xff]  ;;  %v33_v26 = vld [vmem:[%s3164_s0 + $0x30] sm:$0xff] }
   0x7   :  { %v39_v22 = vld [vmem:[%s3164_s0 + $0x60] sm:$0xff]  ;;  %v1774_v24 = vpack.c.bf16 %v32_v21, %v31_v20  ;;  %v34_v27 = vld [vmem:[%s3164_s0 + $0x38] sm:$0xff]  ;;  %v41_v28 = vld [vmem:[%s3164_s0 + $0x70] sm:$0xff] }
   0x8   :  { %113 = vmatpush.bf16.msra.mxu0 %v1443_v6  ;;  %1509 = vmatpush.bf16.msra.mxu2 %v1443_v6  ;;  %v1776_v25 = vpack.c.bf16 %v40_v23, %v39_v22  ;;  %v42_v29 = vld [vmem:[%s3164_s0 + $0x78] sm:$0xff]  ;;  %v1794_v30 = vpack.c.bf16 %v34_v27, %v33_v26  ;;  %v55_v32 = vld [vmem:[%s3167_s2] sm:$0x3]  ;;  %s1646_s0 = smov 32  }
   0x9   :  { %v1796_v31 = vpack.c.bf16 %v42_v29, %v41_v28  ;;  %v1805_v33 = vperm.slane %v55_v32, 0 }
   0xb   :  { %1456 = vmatmul.msk.bf16.vlgmr.msra.gmra.mxu0 %vm81_vm0, %v1726_v10  ;;  %1460 = vmatmul.msk.bf16.vlgmr.msra.gmra.mxu2 %vm81_vm0, %v1728_v11 }
  0x1b   :  { %1457 = vmatmul.msk.bf16.gmra.mxu0 %vm81_vm0, %v1754_v18  ;;  %1461 = vmatmul.msk.bf16.gmra.mxu2 %vm81_vm0, %v1756_v19 }
  0x2b   :  { %1458 = vmatmul.msk.bf16.gmra.mxu0 %vm81_vm0, %v1774_v24  ;;  %1462 = vmatmul.msk.bf16.gmra.mxu2 %vm81_vm0, %v1776_v25 }
  0x3b   :  { %1459 = vmatmul.msk.bf16.gmra.mxu0 %vm81_vm0, %v1794_v30  ;;  %1463 = vmatmul.msk.bf16.gmra.mxu2 %vm81_vm0, %v1796_v31 }
  0x77   :  { %v1834_v5 = vpop.permute.xlu0 %1061 }
  0x78   :  { %v1839_v9 = vpop.permute.xlu1 %959 }
  0x88   :  { %v115_v34 = vpop.f32.mrf.mxu0 }
  0x89   :  { %v116_v35 = vadd.f32 %v115_v34, %v1805_v33 }
  0x8b   :  { %v1472_v36 = vmul.f32 -1.442695, %v116_v35 }
  0x8d   :  { %1516 = vpow2.f32 %v1472_v36 }
  0x8e   :  { %v135_v37 = vpop.f32.mrf.mxu2 }
  0x8f   :  { %v1809_v38 = vadd.f32 %v135_v37, %v1805_v33 }
  0x90   :  { %v117_v39 = vpop.f32.mrf.mxu0 }
  0x91   :  { %v1480_v40 = vmul.f32 -1.442695, %v1809_v38  ;;  %v1813_v41 = vadd.f32 %v117_v39, %v1805_v33 }
  0x93   :  { %v1517_v42 = vpop.eup %1516  ;;  %1518 = vpow2.f32 %v1480_v40  ;;  %v1473_v44 = vmul.f32 -1.442695, %v1813_v41 }
  0x94   :  { %v252_v43 = vadd.f32 1.0, %v1517_v42 }
  0x96   :  { %1520 = vrcp.f32 %v252_v43  ;;  %v137_v45 = vpop.f32.mrf.mxu2  ;;  %v279_v55 = vand.u32 2147483648, %v252_v43  ;;  %v277_v57 = vand.u32 2147483647, %v252_v43  ;;  %vm273_vm2 = vweird.f32 %v252_v43 }
  0x97   :  { %1522 = vpow2.f32 %v1473_v44  ;;  %v1817_v46 = vadd.f32 %v137_v45, %v1805_v33 }
  0x98   :  { %v120_v54 = vpop.f32.mrf.mxu0  ;;  %v280_v62 = vor.u32 1.1754944e-38, %v279_v55  ;;  %vm278_vm4 = vcmp.eq.f32.partialorder %v277_v57, 8.507059e+37 }
  0x99   :  { %v1519_v47 = vpop.eup %1518  ;;  %v1481_v50 = vmul.f32 -1.442695, %v1817_v46  ;;  %v1826_v59 = vadd.f32 %v120_v54, %v1805_v33 }
  0x9a   :  { %v1819_v48 = vadd.f32 1.0, %v1519_v47 }
  0x9b   :  { %v1474_v3 = vmul.f32 -1.442695, %v1826_v59 }
  0x9c   :  { %v1521_v49 = vpop.eup %1520  ;;  %1524 = vrcp.f32 %v1819_v48  ;;  %v399_v28 = vand.u32 2147483648, %v1819_v48  ;;  %vm393_vm6 = vweird.f32 %v1819_v48  ;;  %v397_v32 = vand.u32 2147483647, %v1819_v48 }
  0x9d   :  { %v269_v51 = vmul.f32 %v1521_v49, %v252_v43  ;;  %v1523_v52 = vpop.eup %1522  ;;  %1526 = vpow2.f32 %v1481_v50  ;;  %vm274_vm1 = vweird.f32 %v1521_v49 }
  0x9e   :  { %v1823_v58 = vadd.f32 1.0, %v1523_v52  ;;  %vm275_vm3 = vmor %vm273_vm2, %vm274_vm1  ;;  %v140_v7 = vpop.f32.mrf.mxu2  ;;  %v400_v39 = vor.u32 1.1754944e-38, %v399_v28  ;;  %vm398_vm8 = vcmp.eq.f32.partialorder %v397_v32, 8.507059e+37 }
  0x9f   :  { %v270_v53 = vsub.f32 1.0, %v269_v51  ;;  %v1844_v14 = vadd.f32 %v140_v7, %v1805_v33 }
  0xa0   :  { %1528 = vrcp.f32 %v1823_v58  ;;  %v122_v22 = vpop.f32.mrf.mxu0  ;;  %vm288_vm10 = vweird.f32 %v1823_v58  ;;  %v294_v47 = vand.u32 2147483648, %v1823_v58 }
  0xa1   :  { %v271_v56 = vmul.f32 %v1521_v49, %v270_v53  ;;  %1530 = vpow2.f32 %v1474_v3  ;;  %v1482_v21 = vmul.f32 -1.442695, %v1844_v14  ;;  %v1861_v34 = vadd.f32 %v122_v22, %v1805_v33 }
  0xa2   :  { %v1525_v60 = vpop.eup %1524 }
  0xa3   :  { %v272_v61 = vadd.f32 %v1521_v49, %v271_v56  ;;  %v1527_v0 = vpop.eup %1526  ;;  %v389_v2 = vmul.f32 %v1525_v60, %v1819_v48  ;;  %vm394_vm5 = vweird.f32 %v1525_v60  ;;  %v1475_v40 = vmul.f32 -1.442695, %v1861_v34 }
  0xa4   :  { %v1836_v6 = vadd.f32 1.0, %v1527_v0  ;;  %vm395_vm7 = vmor %vm393_vm6, %vm394_vm5  ;;  %v292_v48 = vand.u32 2147483647, %v1823_v58  ;;  %v295_v56 = vor.u32 1.1754944e-38, %v294_v47 }
  0xa5   :  { %v276_v63 = vsel %vm275_vm3, %v1521_v49, %v272_v61  ;;  %v390_v8 = vsub.f32 1.0, %v389_v2 }
  0xa6   :  { %v1829_v1 = vsel %vm278_vm4, %v280_v62, %v276_v63  ;;  %v1529_v13 = vpop.eup %1528  ;;  %1532 = vrcp.f32 %v1836_v6  ;;  %vm293_vm12 = vcmp.eq.f32.partialorder %v292_v48, 8.507059e+37  ;;  %vm408_vm14 = vweird.f32 %v1836_v6 }
  0xa7   :  { %v508_v4 = vmul.f32 %v1829_v1, %v116_v35  ;;  %v1064_v12 = vmul.f32 %v1834_v5, %v1829_v1  ;;  %v962_v15 = vmul.f32 %v1839_v9, %v1829_v1  ;;  %v391_v16 = vmul.f32 %v1525_v60, %v390_v8  ;;  %v1531_v20 = vpop.eup %1530 }
  0xa8   :  { %v284_v17 = vmul.f32 %v1529_v13, %v1823_v58  ;;  %v1856_v29 = vadd.f32 1.0, %v1531_v20  ;;  %1534 = vpow2.f32 %v1482_v21  ;;  %vm289_vm9 = vweird.f32 %v1529_v13  ;;  %v125_v21 = vpop.f32.mrf.mxu0 }
  0xa9   :  { %556 = vrot.lane.b32.xlu0 %v508_v4, %s1646_s0  ;;  %1096 = vrot.lane.b32.xlu1 %v1064_v12, %s1645_s13  ;;  %v392_v23 = vadd.f32 %v1525_v60, %v391_v16  ;;  %vm290_vm11 = vmor %vm288_vm10, %vm289_vm9  ;;  %v414_v62 = vand.u32 2147483648, %v1836_v6  ;;  %v412_v0 = vand.u32 2147483647, %v1836_v6  ;;  %v1930_v32 = vadd.f32 %v125_v21, %v1805_v33 }
  0xaa   :  { %994 = vrot.lane.b32.xlu2 %v962_v15, %s1645_s13  ;;  %v285_v26 = vsub.f32 1.0, %v284_v17  ;;  %1536 = vrcp.f32 %v1856_v29  ;;  %vm303_vm2 = vweird.f32 %v1856_v29  ;;  %v307_v17 = vand.u32 2147483647, %v1856_v29 }
  0xab   :  { %v396_v35 = vsel %vm395_vm7, %v1525_v60, %v392_v23  ;;  %1538 = vpow2.f32 %v1475_v40  ;;  %v415_v12 = vor.u32 1.1754944e-38, %v414_v62  ;;  %vm413_vm1 = vcmp.eq.f32.partialorder %v412_v0, 8.507059e+37 }
  0xac   :  { %v1853_v27 = vpop.eup %1532  ;;  %v286_v36 = vmul.f32 %v1529_v13, %v285_v26  ;;  %v1868_v42 = vsel %vm398_vm8, %v400_v39, %v396_v35  ;;  %v309_v20 = vand.u32 2147483648, %v1856_v29  ;;  %vm308_vm5 = vcmp.eq.f32.partialorder %v307_v17, 8.507059e+37 }
  0xad   :  { %v404_v37 = vmul.f32 %v1853_v27, %v1836_v6  ;;  %v970_v49 = vmul.f32 %v1839_v9, %v1868_v42  ;;  %v1072_v50 = vmul.f32 %v1834_v5, %v1868_v42  ;;  %v516_v52 = vmul.f32 %v1868_v42, %v1809_v38  ;;  %v142_v38 = vpop.f32.mrf.mxu2 }
  0xae   :  { %v1535_v43 = vpop.eup %1534  ;;  %v287_v44 = vadd.f32 %v1529_v13, %v286_v36  ;;  %vm409_vm13 = vweird.f32 %v1853_v27  ;;  %v1900_v3 = vadd.f32 %v142_v38, %v1805_v33  ;;  %v310_v35 = vor.u32 1.1754944e-38, %v309_v20 }
  0xaf   :  { %v405_v45 = vsub.f32 1.0, %v404_v37  ;;  %v1881_v53 = vadd.f32 1.0, %v1535_v43  ;;  %vm410_vm15 = vmor %vm408_vm14, %vm409_vm13 }
  0xb0   :  { %v1877_v51 = vpop.eup %1536  ;;  %v291_v54 = vsel %vm290_vm11, %v1529_v13, %v287_v44  ;;  %v1483_v6 = vmul.f32 -1.442695, %v1900_v3  ;;  %v1476_v44 = vmul.f32 -1.442695, %v1930_v32 }
  0xb1   :  { %v406_v55 = vmul.f32 %v1853_v27, %v405_v45  ;;  %1010 = vrot.lane.b32.xlu1 %v970_v49, %s1645_s13  ;;  %1112 = vrot.lane.b32.xlu0 %v1072_v50, %s1645_s13  ;;  %v299_v57 = vmul.f32 %v1877_v51, %v1856_v29  ;;  %v1889_v58 = vsel %vm293_vm12, %v295_v56, %v291_v54  ;;  %1540 = vrcp.f32 %v1881_v53  ;;  %v1539_v60 = vpop.eup %1538 }
  0xb2   :  { %1176 = vrot.lane.b32.xlu2 %v508_v4, %s1645_s13  ;;  %v509_v63 = vmul.f32 %v1889_v58, %v1813_v41  ;;  %v1902_v4 = vadd.f32 1.0, %v1539_v60  ;;  %v1065_v13 = vmul.f32 %v1834_v5, %v1889_v58  ;;  %vm304_vm3 = vweird.f32 %v1877_v51 }
  0xb3   :  { %v407_v61 = vadd.f32 %v1853_v27, %v406_v55  ;;  %v300_v2 = vsub.f32 1.0, %v299_v57  ;;  %v963_v26 = vmul.f32 %v1839_v9, %v1889_v58  ;;  %vm1925_vm4 = vmor %vm303_vm2, %vm304_vm3  ;;  %vm423_vm6 = vweird.f32 %v1881_v53 }
  0xb4   :  { %1542 = vrcp.f32 %v1902_v4  ;;  %v429_v48 = vand.u32 2147483648, %v1881_v53  ;;  %vm318_vm10 = vweird.f32 %v1902_v4 }
  0xb5   :  { %v411_v7 = vsel %vm410_vm15, %v1853_v27, %v407_v61  ;;  %v301_v41 = vmul.f32 %v1877_v51, %v300_v2  ;;  %1544 = vpow2.f32 %v1483_v6  ;;  %v145_v55 = vpop.f32.mrf.mxu2  ;;  %v324_v61 = vand.u32 2147483648, %v1902_v4 }
  0xb6   :  { %v1911_v15 = vsel %vm413_vm1, %v415_v12, %v411_v7  ;;  %1546 = vpow2.f32 %v1476_v44  ;;  %v430_v54 = vor.u32 1.1754944e-38, %v429_v48  ;;  %v1959_v38 = vadd.f32 %v145_v55, %v1805_v33 }
  0xb7   :  { %v1541_v8 = vpop.eup %1540  ;;  %v302_v22 = vadd.f32 %v1877_v51, %v301_v41  ;;  %v1073_v23 = vmul.f32 %v1834_v5, %v1911_v15  ;;  %v971_v37 = vmul.f32 %v1839_v9, %v1911_v15  ;;  %v325_v12 = vor.u32 1.1754944e-38, %v324_v61 }
  0xb8   :  { %v419_v16 = vmul.f32 %v1541_v8, %v1881_v53  ;;  %vm424_vm7 = vweird.f32 %v1541_v8  ;;  %v1484_v7 = vmul.f32 -1.442695, %v1959_v38 }
  0xb9   :  { %1192 = vrot.lane.b32.xlu1 %v516_v52, %s1645_s13  ;;  %558 = vrot.lane.b32.xlu0 %v509_v63, %s1646_s0  ;;  %v306_v36 = vsel %vm1925_vm4, %v1877_v51, %v302_v22  ;;  %v427_v51 = vand.u32 2147483647, %v1881_v53  ;;  %vm425_vm8 = vmor %vm423_vm6, %vm424_vm7 }
  0xba   :  { %572 = vrot.lane.b32.xlu2 %v516_v52, %s1646_s0  ;;  %v420_v28 = vsub.f32 1.0, %v419_v16  ;;  %v1543_v29 = vpop.eup %1542  ;;  %v1942_v45 = vsel %vm308_vm5, %v310_v35, %v306_v36 }
  0xbb   :  { %v1545_v39 = vpop.eup %1544  ;;  %v314_v43 = vmul.f32 %v1543_v29, %v1902_v4  ;;  %v510_v47 = vmul.f32 %v1942_v45, %v1826_v59  ;;  %v517_v59 = vmul.f32 %v1911_v15, %v1817_v46  ;;  %vm428_vm9 = vcmp.eq.f32.partialorder %v427_v51, 8.507059e+37 }
  0xbc   :  { %v421_v40 = vmul.f32 %v1541_v8, %v420_v28  ;;  %v1948_v49 = vadd.f32 1.0, %v1545_v39  ;;  %v1547_v53 = vpop.eup %1546  ;;  %vm319_vm11 = vweird.f32 %v1543_v29  ;;  %v964_v60 = vmul.f32 %v1839_v9, %v1942_v45 }
  0xbd   :  { %v315_v52 = vsub.f32 1.0, %v314_v43  ;;  %vm320_vm12 = vmor %vm318_vm10, %vm319_vm11  ;;  %v1969_v2 = vadd.f32 1.0, %v1547_v53  ;;  %v147_v39 = vpop.f32.mrf.mxu2 }
  0xbe   :  { %v422_v50 = vadd.f32 %v1541_v8, %v421_v40  ;;  %1548 = vrcp.f32 %v1948_v49  ;;  %vm438_vm14 = vweird.f32 %v1948_v49  ;;  %v444_v36 = vand.u32 2147483648, %v1948_v49 }
  0xbf   :  { %v316_v57 = vmul.f32 %v1543_v29, %v315_v52  ;;  %1550 = vrcp.f32 %v1969_v2  ;;  %v442_v43 = vand.u32 2147483647, %v1948_v49  ;;  %vm333_vm3 = vweird.f32 %v1969_v2 }
  0xc0   :  { %v426_v56 = vsel %vm425_vm8, %v1541_v8, %v422_v50  ;;  %1552 = vpow2.f32 %v1484_v7  ;;  %v445_v48 = vor.u32 1.1754944e-38, %v444_v36 }
  0xc1   :  { %1114 = vrot.lane.b32.xlu1 %v1073_v23, %s1645_s13  ;;  %996 = vrot.lane.b32.xlu0 %v963_v26, %s1645_s13  ;;  %v1963_v46 = vsel %vm428_vm9, %v430_v54, %v426_v56  ;;  %v317_v62 = vadd.f32 %v1543_v29, %v316_v57  ;;  %vm443_vm2 = vcmp.eq.f32.partialorder %v442_v43, 8.507059e+37  ;;  %v339_v54 = vand.u32 2147483648, %v1969_v2 }
  0xc2   :  { %1098 = vrot.lane.b32.xlu2 %v1065_v13, %s1645_s13  ;;  %v1074_v8 = vmul.f32 %v1834_v5, %v1963_v46  ;;  %v1066_v13 = vmul.f32 %v1834_v5, %v1942_v45  ;;  %v518_v28 = vmul.f32 %v1963_v46, %v1844_v14  ;;  %v972_v35 = vmul.f32 %v1839_v9, %v1963_v46 }
  0xc3   :  { %v321_v41 = vsel %vm320_vm12, %v1543_v29, %v317_v62  ;;  %v337_v57 = vand.u32 2147483647, %v1969_v2 }
  0xc4   :  { %v1549_v0 = vpop.eup %1548 }
  0xc5   :  { %v434_v6 = vmul.f32 %v1549_v0, %v1948_v49  ;;  %v1551_v22 = vpop.eup %1550  ;;  %vm439_vm15 = vweird.f32 %v1549_v0  ;;  %vm338_vm6 = vcmp.eq.f32.partialorder %v337_v57, 8.507059e+37 }
  0xc6   :  { %v1553_v23 = vpop.eup %1552  ;;  %v329_v29 = vmul.f32 %v1551_v22, %v1969_v2  ;;  %vm440_vm1 = vmor %vm438_vm14, %vm439_vm15  ;;  %vm334_vm4 = vweird.f32 %v1551_v22 }
  0xc7   :  { %v435_v17 = vsub.f32 1.0, %v434_v6  ;;  %vm2019_vm5 = vmor %vm333_vm3, %vm334_vm4 }
  0xc8   :  { %v330_v44 = vsub.f32 1.0, %v329_v29 }
  0xc9   :  { %560 = vrot.lane.b32.xlu1 %v510_v47, %s1646_s0  ;;  %1178 = vrot.lane.b32.xlu0 %v509_v63, %s1645_s13  ;;  %v322_v63 = vand.u32 2147483647, %v1902_v4  ;;  %v127_v4 = vpop.f32.mrf.mxu0  ;;  %v436_v26 = vmul.f32 %v1549_v0, %v435_v17 }
  0xca   :  { %1012 = vrot.lane.b32.xlu2 %v971_v37, %s1645_s13  ;;  %v1984_v20 = vadd.f32 %v127_v4, %v1805_v33  ;;  %v1997_v37 = vadd.f32 1.0, %v1553_v23  ;;  %v331_v49 = vmul.f32 %v1551_v22, %v330_v44 }
  0xcb   :  { %vm323_vm13 = vcmp.eq.f32.partialorder %v322_v63, 8.507059e+37  ;;  %v437_v40 = vadd.f32 %v1549_v0, %v436_v26  ;;  %v340_v63 = vor.u32 1.1754944e-38, %v339_v54 }
  0xcc   :  { %v1979_v16 = vsel %vm323_vm13, %v325_v12, %v321_v41  ;;  %v1477_v27 = vmul.f32 -1.442695, %v1984_v20  ;;  %v332_v56 = vadd.f32 %v1551_v22, %v331_v49  ;;  %vm453_vm7 = vweird.f32 %v1997_v37 }
  0xcd   :  { %v965_v21 = vmul.f32 %v1839_v9, %v1979_v16  ;;  %v511_v14 = vmul.f32 %v1979_v16, %v1861_v34  ;;  %v441_v50 = vsel %vm440_vm1, %v1549_v0, %v437_v40  ;;  %v1067_v2 = vmul.f32 %v1834_v5, %v1979_v16 }
  0xce   :  { %1554 = vpow2.f32 %v1477_v27  ;;  %v2010_v52 = vsel %vm443_vm2, %v445_v48, %v441_v50 }
  0xcf   :  { %1556 = vrcp.f32 %v1997_v37  ;;  %v519_v55 = vmul.f32 %v2010_v52, %v1900_v3  ;;  %v336_v3 = vsel %vm2019_vm5, %v1551_v22, %v332_v56  ;;  %v1075_v7 = vmul.f32 %v1834_v5, %v2010_v52  ;;  %v150_v22 = vpop.f32.mrf.mxu2 }
  0xd0   :  { %v2039_v41 = vsel %vm338_vm6, %v340_v63, %v336_v3  ;;  %v973_v23 = vmul.f32 %v1839_v9, %v2010_v52  ;;  %v2066_v36 = vadd.f32 %v150_v22, %v1805_v33 }
  0xd1   :  { %998 = vrot.lane.b32.xlu1 %v964_v60, %s1645_s13  ;;  %574 = vrot.lane.b32.xlu0 %v517_v59, %s1646_s0  ;;  %v130_v53 = vpop.f32.mrf.mxu0  ;;  %v512_v4 = vmul.f32 %v2039_v41, %v1930_v32  ;;  %v966_v26 = vmul.f32 %v1839_v9, %v2039_v41  ;;  %v459_v32 = vand.u32 2147483648, %v1997_v37 }
  0xd2   :  { %1194 = vrot.lane.b32.xlu2 %v517_v59, %s1645_s13  ;;  %v2028_v0 = vadd.f32 %v130_v53, %v1805_v33  ;;  %v1486_v50 = vmul.f32 -1.442695, %v2066_v36  ;;  %v1160_v53 = vsub.f32 1.0, %v1829_v1 }
  0xd3   :  { %v460_v43 = vor.u32 1.1754944e-38, %v459_v32 }
  0xd4   :  { %v1555_v59 = vpop.eup %1554  ;;  %v1478_v6 = vmul.f32 -1.442695, %v2028_v0 }
  0xd5   :  { %v1557_v34 = vpop.eup %1556  ;;  %v2023_v61 = vadd.f32 1.0, %v1555_v59 }
  0xd6   :  { %v449_v62 = vmul.f32 %v1557_v34, %v1997_v37  ;;  %vm454_vm8 = vweird.f32 %v1557_v34 }
  0xd7   :  { %vm2061_vm9 = vmor %vm453_vm7, %vm454_vm8  ;;  %vm348_vm11 = vweird.f32 %v2023_v61  ;;  %v354_v60 = vand.u32 2147483648, %v2023_v61  ;;  %v352_v63 = vand.u32 2147483647, %v2023_v61 }
  0xd8   :  { %v450_v12 = vsub.f32 1.0, %v449_v62 }
  0xd9   :  { %1180 = vrot.lane.b32.xlu1 %v510_v47, %s1645_s13  ;;  %1100 = vrot.lane.b32.xlu0 %v1066_v13, %s1645_s13  ;;  %v2005_v47 = vadd.f32 %v147_v39, %v1805_v33  ;;  %v1068_v39 = vmul.f32 %v1834_v5, %v2039_v41  ;;  %vm353_vm14 = vcmp.eq.f32.partialorder %v352_v63, 8.507059e+37 }
  0xda   :  { %1116 = vrot.lane.b32.xlu2 %v1074_v8, %s1645_s13  ;;  %v451_v17 = vmul.f32 %v1557_v34, %v450_v12 }
  0xdb   :  { %v1485_v51 = vmul.f32 -1.442695, %v2005_v47 }
  0xdc   :  { %v452_v27 = vadd.f32 %v1557_v34, %v451_v17 }
  0xdd   :  { %1558 = vpow2.f32 %v1485_v51  ;;  %v132_v51 = vpop.f32.mrf.mxu0 }
  0xde   :  { %1560 = vrcp.f32 %v2023_v61  ;;  %v2091_v56 = vadd.f32 %v132_v51, %v1805_v33 }
  0xdf   :  { %1562 = vpow2.f32 %v1478_v6 }
  0xe0   :  { %v1479_v1 = vmul.f32 -1.442695, %v2091_v56 }
  0xe1   :  { %576 = vrot.lane.b32.xlu1 %v518_v28, %s1646_s0  ;;  %1014 = vrot.lane.b32.xlu0 %v972_v35, %s1645_s13  ;;  %v152_v35 = vpop.f32.mrf.mxu2 }
  0xe2   :  { %1000 = vrot.lane.b32.xlu2 %v965_v21, %s1645_s13 }
  0xe3   :  { %v1559_v8 = vpop.eup %1558 }
  0xe4   :  { %v2044_v13 = vadd.f32 1.0, %v1559_v8  ;;  %v2047_v21 = vpop.eup %1560 }
  0xe5   :  { %v344_v29 = vmul.f32 %v2047_v21, %v2023_v61  ;;  %v1563_v40 = vpop.eup %1562  ;;  %vm349_vm12 = vweird.f32 %v2047_v21 }
  0xe6   :  { %1564 = vrcp.f32 %v2044_v13  ;;  %v2080_v49 = vadd.f32 1.0, %v1563_v40  ;;  %vm2104_vm13 = vmor %vm348_vm11, %vm349_vm12  ;;  %vm468_vm15 = vweird.f32 %v2044_v13  ;;  %v1504_v40 = vld [vmem:[%s3163_s1 + $0x4] sm:$0xf] }
  0xe7   :  { %v345_v44 = vsub.f32 1.0, %v344_v29  ;;  %1566 = vpow2.f32 %v1486_v50 }
  0xe8   :  { %1568 = vrcp.f32 %v2080_v49  ;;  %vm363_vm4 = vweird.f32 %v2080_v49 }
  0xe9   :  { %562 = vrot.lane.b32.xlu1 %v511_v14, %s1646_s0  ;;  %1196 = vrot.lane.b32.xlu0 %v518_v28, %s1645_s13  ;;  %v457_v28 = vand.u32 2147483647, %v1997_v37  ;;  %1570 = vpow2.f32 %v1479_v1 }
  0xea   :  { %1182 = vrot.lane.b32.xlu2 %v511_v14, %s1645_s13  ;;  %v456_v14 = vsel %vm2061_vm9, %v1557_v34, %v452_v27  ;;  %v346_v34 = vmul.f32 %v2047_v21, %v345_v44  ;;  %v474_v27 = vand.u32 2147483648, %v2044_v13 }
  0xeb   :  { %vm458_vm10 = vcmp.eq.f32.partialorder %v457_v28, 8.507059e+37 }
  0xec   :  { %v2077_v48 = vpop.eup %1564  ;;  %v2082_v59 = vsel %vm458_vm10, %v460_v43, %v456_v14  ;;  %v347_v62 = vadd.f32 %v2047_v21, %v346_v34  ;;  %v1444_v43 = vld [vmem:[%s3163_s1 + $0x8] sm:$0xf0]  ;;  %v472_v14 = vand.u32 2147483647, %v2044_v13 }
  0xed   :  { %v464_v54 = vmul.f32 %v2077_v48, %v2044_v13  ;;  %v974_v57 = vmul.f32 %v1839_v9, %v2082_v59  ;;  %v520_v8 = vmul.f32 %v2082_v59, %v1959_v38  ;;  %v1076_v12 = vmul.f32 %v1834_v5, %v2082_v59  ;;  %v1567_v6 = vpop.eup %1566  ;;  %v1506_v38 = vld [vmem:[%s3163_s1 + $0x14] sm:$0xf] }
  0xee   :  { %v2113_v61 = vpop.eup %1568  ;;  %v351_v17 = vsel %vm2104_vm13, %v2047_v21, %v347_v62  ;;  %vm469_vm1 = vweird.f32 %v2077_v48  ;;  %v1168_v21 = vsub.f32 1.0, %v1868_v42  ;;  %v2135_v29 = vadd.f32 1.0, %v1567_v6 }
  0xef   :  { %v465_v3 = vsub.f32 1.0, %v464_v54  ;;  %v359_v28 = vmul.f32 %v2113_v61, %v2080_v49  ;;  %v1447_v50 = vor.u32 %v1504_v40, %v1444_v43  ;;  %vm2158_vm2 = vmor %vm468_vm15, %vm469_vm1  ;;  %v2163_v54 = vadd.f32 %v152_v35, %v1805_v33  ;;  %v1571_v33 = vpop.eup %1570 }
  0xf0   :  { %1572 = vrcp.f32 %v2135_v29  ;;  %vm473_vm3 = vcmp.eq.f32.partialorder %v472_v14, 8.507059e+37  ;;  %vm364_vm5 = vweird.f32 %v2113_v61  ;;  %vm483_vm8 = vweird.f32 %v2135_v29 }
  0xf1   :  { %1102 = vrot.lane.b32.xlu1 %v1067_v2, %s1645_s13  ;;  %1118 = vrot.lane.b32.xlu0 %v1075_v7, %s1645_s13  ;;  %v466_v22 = vmul.f32 %v2077_v48, %v465_v3  ;;  %v360_v63 = vsub.f32 1.0, %v359_v28  ;;  %v1487_v7 = vmul.f32 -1.442695, %v2163_v54  ;;  %vm365_vm6 = vmor %vm363_vm4, %vm364_vm5 }
  0xf2   :  { %578 = vrot.lane.b32.xlu2 %v519_v55, %s1646_s0 }
  0xf3   :  { %v361_v1 = vmul.f32 %v2113_v61, %v360_v63  ;;  %1574 = vpow2.f32 %v1487_v7 }
  0xf5   :  { %v362_v6 = vadd.f32 %v2113_v61, %v361_v1 }
  0xf9   :  { %1016 = vrot.lane.b32.xlu1 %v973_v23, %s1645_s13  ;;  %1002 = vrot.lane.b32.xlu0 %v966_v26, %s1645_s13  ;;  %v1452_v23 = vld [vmem:[%s3163_s1 + $0x18] sm:$0xf0] }
  0xfa   :  { %564 = vrot.lane.b32.xlu2 %v512_v4, %s1646_s0  ;;  %v1455_v26 = vor.u32 %v1506_v38, %v1452_v23 }
  0xfc   :  { %1510 = vmatpush.bf16.msra.mxu3 %v1455_v26  ;;  %161 = vmatpush.bf16.msra.mxu1 %v1455_v26  ;;  %v366_v26 = vsel %vm365_vm6, %v2113_v61, %v362_v6 }
 0x100   :  { %1511 = vmatpush.bf16.msra.mxu3 %v1447_v50  ;;  %162 = vmatpush.bf16.msra.mxu1 %v1447_v50  ;;  %v489_v50 = vand.u32 2147483648, %v2135_v29 }
 0x101   :  { %1198 = vrot.lane.b32.xlu1 %v519_v55, %s1645_s13  ;;  %1184 = vrot.lane.b32.xlu0 %v512_v4, %s1645_s13  ;;  %v355_v4 = vor.u32 1.1754944e-38, %v354_v60 }
 0x102   :  { %1104 = vrot.lane.b32.xlu2 %v1068_v39, %s1645_s13 }
 0x103   :  { %v2130_v32 = vsel %vm353_vm14, %v355_v4, %v351_v17  ;;  %1468 = vmatmul.msk.bf16.vlgmr.msra.gmra.mxu3 %vm81_vm0, %v1728_v11  ;;  %1464 = vmatmul.msk.bf16.vlgmr.msra.gmra.mxu1 %vm81_vm0, %v1726_v10  ;;  %v369_v10 = vand.u32 2147483648, %v2080_v49  ;;  %v367_v4 = vand.u32 2147483647, %v2080_v49 }
 0x104   :  { %v995_v37 = vpop.permute.xlu2 %994  ;;  %v1069_v60 = vmul.f32 %v1834_v5, %v2130_v32 }
 0x105   :  { %1042 = vst.msk [vmem:[%s3168_s7] sm:$0xff] %vm81_vm0, %v995_v37  ;;  %v467_v37 = vadd.f32 %v2077_v48, %v466_v22  ;;  %v370_v38 = vor.u32 1.1754944e-38, %v369_v10  ;;  %vm368_vm7 = vcmp.eq.f32.partialorder %v367_v4, 8.507059e+37 }
 0x107   :  { %v471_v62 = vsel %vm2158_vm2, %v2077_v48, %v467_v37 }
 0x109   :  { %1120 = vrot.lane.b32.xlu1 %v1076_v12, %s1645_s13  ;;  %580 = vrot.lane.b32.xlu0 %v520_v8, %s1646_s0  ;;  %v2198_v12 = vpop.eup %1572 }
 0x10a   :  { %1018 = vrot.lane.b32.xlu2 %v974_v57, %s1645_s13  ;;  %v967_v57 = vmul.f32 %v1839_v9, %v2130_v32  ;;  %v479_v17 = vmul.f32 %v2198_v12, %v2135_v29  ;;  %v1575_v23 = vpop.eup %1574  ;;  %vm484_vm9 = vweird.f32 %v2198_v12 }
 0x10b   :  { %v2226_v40 = vadd.f32 1.0, %v1575_v23  ;;  %vm2260_vm10 = vmor %vm483_vm8, %vm484_vm9 }
 0x10c   :  { %v1177_v55 = vpop.permute.xlu2 %1176 }
 0x10d   :  { %v2102_v2 = vmul.f32 %v1177_v55, %v1160_v53  ;;  %v475_v55 = vor.u32 1.1754944e-38, %v474_v27  ;;  %v480_v27 = vsub.f32 1.0, %v479_v17  ;;  %vm498_vm1 = vweird.f32 %v2226_v40 }
 0x10f   :  { %v2192_v48 = vsel %vm473_vm3, %v475_v55, %v471_v62  ;;  %v481_v61 = vmul.f32 %v2198_v12, %v480_v27 }
 0x110   :  { %v975_v11 = vmul.f32 %v1839_v9, %v2192_v48  ;;  %v1077_v22 = vmul.f32 %v1834_v5, %v2192_v48  ;;  %v521_v28 = vmul.f32 %v2192_v48, %v2005_v47 }
 0x111   :  { %1004 = vrot.lane.b32.xlu1 %v967_v57, %s1645_s13  ;;  %1106 = vrot.lane.b32.xlu0 %v1069_v60, %s1645_s13  ;;  %v482_v51 = vadd.f32 %v2198_v12, %v481_v61 }
 0x112   :  { %1200 = vrot.lane.b32.xlu2 %v520_v8, %s1645_s13  ;;  %v2194_v8 = vadd.f32 1.0, %v1571_v33  ;;  %v490_v33 = vor.u32 1.1754944e-38, %v489_v50 }
 0x113   :  { %1469 = vmatmul.msk.bf16.gmra.mxu3 %vm81_vm0, %v1756_v19  ;;  %1465 = vmatmul.msk.bf16.gmra.mxu1 %vm81_vm0, %v1754_v18  ;;  %v486_v62 = vsel %vm2260_vm10, %v2198_v12, %v482_v51 }
 0x114   :  { %v573_v39 = vpop.permute.xlu2 %572  ;;  %1576 = vrcp.f32 %v2194_v8  ;;  %vm378_vm12 = vweird.f32 %v2194_v8  ;;  %v384_v7 = vand.u32 2147483648, %v2194_v8  ;;  %v382_v12 = vand.u32 2147483647, %v2194_v8 }
 0x115   :  { %612 = vst.msk [vmem:[%s3169_s9 + $0x40] sm:$0xff] %vm81_vm0, %v573_v39  ;;  %v2152_v44 = vmul.f32 %v1168_v21, %v573_v39  ;;  %v2224_v39 = vsel %vm368_vm7, %v370_v38, %v366_v26  ;;  %1578 = vrcp.f32 %v2226_v40 }
 0x116   :  { %v968_v14 = vmul.f32 %v1839_v9, %v2224_v39  ;;  %v514_v19 = vmul.f32 %v2224_v39, %v2028_v0  ;;  %v1070_v60 = vmul.f32 %v1834_v5, %v2224_v39  ;;  %v385_v17 = vor.u32 1.1754944e-38, %v384_v7 }
 0x117   :  { %vm383_vm15 = vcmp.eq.f32.partialorder %v382_v12, 8.507059e+37 }
 0x119   :  { %1020 = vrot.lane.b32.xlu0 %v975_v11, %s1645_s13 }
 0x11a   :  { %v2220_v49 = vpop.eup %1576 }
 0x11b   :  { %v557_v34 = vpop.permute.xlu0 %556  ;;  %v1097_v3 = vpop.permute.xlu1 %1096  ;;  %v374_v43 = vmul.f32 %v2220_v49, %v2194_v8  ;;  %vm379_vm13 = vweird.f32 %v2220_v49 }
 0x11c   :  { %604 = vst.msk [vmem:[%s3169_s9] sm:$0xff] %vm81_vm0, %v557_v34  ;;  %v2173_v13 = vmul.f32 %v1160_v53, %v557_v34  ;;  %v513_v53 = vmul.f32 %v2130_v32, %v1984_v20  ;;  %v1099_v20 = vpop.permute.xlu2 %1098  ;;  %v487_v34 = vand.u32 2147483647, %v2135_v29  ;;  %v1579_v63 = vpop.eup %1578  ;;  %vm2294_vm14 = vmor %vm378_vm12, %vm379_vm13 }
 0x11d   :  { %1144 = vst.msk [vmem:[%s3170_s8] sm:$0xff] %vm81_vm0, %v1097_v3  ;;  %v375_v57 = vsub.f32 1.0, %v374_v43  ;;  %v494_v11 = vmul.f32 %v1579_v63, %v2226_v40  ;;  %vm499_vm2 = vweird.f32 %v1579_v63 }
 0x11e   :  { %566 = vrot.lane.b32.xlu2 %v513_v53, %s1646_s0  ;;  %1145 = vst.msk [vmem:[%s3170_s8 + $0x8] sm:$0xff] %vm81_vm0, %v1099_v20  ;;  %1186 = vrot.lane.b32.xlu1 %v513_v53, %s1645_s13  ;;  %vm488_vm11 = vcmp.eq.f32.partialorder %v487_v34, 8.507059e+37  ;;  %vm500_vm3 = vmor %vm498_vm1, %vm499_vm2 }
 0x11f   :  { %v376_v29 = vmul.f32 %v2220_v49, %v375_v57  ;;  %v2282_v53 = vsel %vm488_vm11, %v490_v33, %v486_v62  ;;  %v1161_v62 = vsub.f32 1.0, %v1889_v58 }
 0x120   :  { %v976_v10 = vmul.f32 %v1839_v9, %v2282_v53  ;;  %v1078_v6 = vmul.f32 %v1834_v5, %v2282_v53  ;;  %v522_v38 = vmul.f32 %v2282_v53, %v2066_v36  ;;  %v504_v36 = vand.u32 2147483648, %v2226_v40 }
 0x121   :  { %1202 = vrot.lane.b32.xlu0 %v521_v28, %s1645_s13  ;;  %v377_v1 = vadd.f32 %v2220_v49, %v376_v29  ;;  %v1169_v29 = vsub.f32 1.0, %v1911_v15 }
 0x123   :  { %v1011_v47 = vpop.permute.xlu1 %1010  ;;  %v1113_v37 = vpop.permute.xlu0 %1112  ;;  %v381_v8 = vsel %vm2294_vm14, %v2220_v49, %v377_v1  ;;  %1470 = vmatmul.msk.bf16.gmra.mxu3 %vm81_vm0, %v1776_v25  ;;  %1466 = vmatmul.msk.bf16.gmra.mxu1 %vm81_vm0, %v1774_v24 }
 0x124   :  { %v1013_v35 = vpop.permute.xlu2 %1012  ;;  %1050 = vst.msk [vmem:[%s3168_s7 + $0x40] sm:$0xff] %vm81_vm0, %v1011_v47  ;;  %v2317_v27 = vsel %vm383_vm15, %v385_v17, %v381_v8 }
 0x125   :  { %1051 = vst.msk [vmem:[%s3168_s7 + $0x48] sm:$0xff] %vm81_vm0, %v1013_v35  ;;  %v969_v24 = vmul.f32 %v1839_v9, %v2317_v27  ;;  %v502_v35 = vand.u32 2147483647, %v2226_v40  ;;  %v1071_v47 = vmul.f32 %v1834_v5, %v2317_v27  ;;  %v515_v40 = vmul.f32 %v2317_v27, %v2091_v56 }
 0x126   :  { %1122 = vrot.lane.b32.xlu2 %v1077_v22, %s1645_s13  ;;  %582 = vrot.lane.b32.xlu1 %v521_v28, %s1646_s0  ;;  %1152 = vst.msk [vmem:[%s3170_s8 + $0x40] sm:$0xff] %vm81_vm0, %v1113_v37  ;;  %v495_v22 = vsub.f32 1.0, %v494_v11  ;;  %v505_v37 = vor.u32 1.1754944e-38, %v504_v36 }
 0x127   :  { %vm503_vm4 = vcmp.eq.f32.partialorder %v502_v35, 8.507059e+37 }
 0x128   :  { %v496_v49 = vmul.f32 %v1579_v63, %v495_v22 }
 0x129   :  { %568 = vrot.lane.b32.xlu0 %v514_v19, %s1646_s0 }
 0x12a   :  { %v497_v28 = vadd.f32 %v1579_v63, %v496_v49 }
 0x12b   :  { %v2278_v0 = vpop.permute.xlu1 %1192  ;;  %v2280_v3 = vpop.permute.xlu0 %558 }
 0x12c   :  { %v2268_v55 = vpop.permute.xlu2 %1194  ;;  %605 = vst.msk [vmem:[%s3169_s9 + $0x8] sm:$0xff] %vm81_vm0, %v2280_v3  ;;  %v1321_v58 = vmul.f32 %v1161_v62, %v2280_v3 }
 0x12e   :  { %1006 = vrot.lane.b32.xlu2 %v968_v14, %s1645_s13  ;;  %1108 = vrot.lane.b32.xlu1 %v1070_v60, %s1645_s13  ;;  %v501_v14 = vsel %vm500_vm3, %v1579_v63, %v497_v28  ;;  %v1233_v63 = vmul.f32 %v2268_v55, %v1169_v29  ;;  %v1170_v55 = vsub.f32 1.0, %v1963_v46  ;;  %v1163_v46 = vsub.f32 1.0, %v1979_v16 }
 0x12f   :  { %v2353_v51 = vsel %vm503_vm4, %v505_v37, %v501_v14  ;;  %v1171_v16 = vsub.f32 1.0, %v2010_v52  ;;  %v1165_v37 = vsub.f32 1.0, %v2130_v32 }
 0x130   :  { %v977_v18 = vmul.f32 %v1839_v9, %v2353_v51  ;;  %v523_v9 = vmul.f32 %v2353_v51, %v2163_v54  ;;  %v1232_v54 = vmul.f32 %v2278_v0, %v1168_v21 }
 0x131   :  { %1124 = vrot.lane.b32.xlu0 %v1078_v6, %s1645_s13 }
 0x133   :  { %v1115_v23 = vpop.permute.xlu1 %1114  ;;  %v997_v26 = vpop.permute.xlu0 %996  ;;  %1471 = vmatmul.msk.bf16.gmra.mxu3 %vm81_vm0, %v1796_v31  ;;  %1467 = vmatmul.msk.bf16.gmra.mxu1 %vm81_vm0, %v1794_v30  ;;  %v1079_v31 = vmul.f32 %v1834_v5, %v2353_v51 }
 0x134   :  { %v1117_v4 = vpop.permute.xlu2 %1116  ;;  %1153 = vst.msk [vmem:[%s3170_s8 + $0x48] sm:$0xff] %vm81_vm0, %v1115_v23 }
 0x135   :  { %1154 = vst.msk [vmem:[%s3170_s8 + $0x50] sm:$0xff] %vm81_vm0, %v1117_v4 }
 0x136   :  { %1188 = vrot.lane.b32.xlu2 %v514_v19, %s1645_s13  ;;  %1022 = vrot.lane.b32.xlu1 %v976_v10, %s1645_s13  ;;  %1043 = vst.msk [vmem:[%s3168_s7 + $0x8] sm:$0xff] %vm81_vm0, %v997_v26  ;;  %v1164_v26 = vsub.f32 1.0, %v2039_v41  ;;  %v1172_v41 = vsub.f32 1.0, %v2082_v59 }
 0x139   :  { %1008 = vrot.lane.b32.xlu0 %v969_v24, %s1645_s13 }
 0x13b   :  { %v2339_v61 = vpop.permute.xlu1 %560  ;;  %v1179_v43 = vpop.permute.xlu0 %1178 }
 0x13c   :  { %v1001_v25 = vpop.permute.xlu2 %1000  ;;  %606 = vst.msk [vmem:[%s3169_s9 + $0x10] sm:$0xff] %vm81_vm0, %v2339_v61 }
 0x13d   :  { %1045 = vst.msk [vmem:[%s3168_s7 + $0x18] sm:$0xff] %vm81_vm0, %v1001_v25 }
 0x13e   :  { %584 = vrot.lane.b32.xlu2 %v522_v38, %s1646_s0  ;;  %1204 = vrot.lane.b32.xlu1 %v522_v38, %s1645_s13 }
 0x141   :  { %1190 = vrot.lane.b32.xlu0 %v515_v40, %s1645_s13 }
 0x143   :  { %v999_v34 = vpop.permute.xlu1 %998  ;;  %v575_v57 = vpop.permute.xlu0 %574 }
 0x144   :  { %v2351_v50 = vpop.permute.xlu2 %1182  ;;  %1044 = vst.msk [vmem:[%s3168_s7 + $0x10] sm:$0xff] %vm81_vm0, %v999_v34  ;;  %v1329_v0 = vmul.f32 %v1169_v29, %v575_v57 }
 0x145   :  { %613 = vst.msk [vmem:[%s3169_s9 + $0x48] sm:$0xff] %vm81_vm0, %v575_v57  ;;  %v1227_v4 = vmul.f32 %v2351_v50, %v1163_v46 }
 0x146   :  { %1110 = vrot.lane.b32.xlu2 %v1071_v47, %s1645_s13  ;;  %570 = vrot.lane.b32.xlu1 %v515_v40, %s1646_s0 }
 0x149   :  { %586 = vrot.lane.b32.xlu0 %v523_v9, %s1646_s0 }
 0x14b   :  { %v1181_v30 = vpop.permute.xlu1 %1180  ;;  %v1101_v19 = vpop.permute.xlu0 %1100 }
 0x14c   :  { %v2376_v56 = vpop.permute.xlu2 %578  ;;  %1146 = vst.msk [vmem:[%s3170_s8 + $0x10] sm:$0xff] %vm81_vm0, %v1101_v19  ;;  %v1644_v19 = vld [vmem:[%s3167_s2] sm:$0x3] }
 0x14d   :  { %615 = vst.msk [vmem:[%s3169_s9 + $0x58] sm:$0xff] %vm81_vm0, %v2376_v56  ;;  %v1331_v49 = vmul.f32 %v1171_v16, %v2376_v56 }
 0x14e   :  { %1024 = vrot.lane.b32.xlu2 %v977_v18, %s1645_s13  ;;  %1126 = vrot.lane.b32.xlu1 %v1079_v31, %s1645_s13  ;;  %v1166_v18 = vsub.f32 1.0, %v2224_v39  ;;  %v1173_v31 = vsub.f32 1.0, %v2192_v48 }
 0x151   :  { %1256 = vrot.lane.b32.xlu0 %v2102_v2, %s1645_s13  ;;  %v1225_v2 = vmul.f32 %v1179_v43, %v1161_v62 }
 0x153   :  { %v577_v60 = vpop.permute.xlu1 %576  ;;  %v1015_v33 = vpop.permute.xlu0 %1014 }
 0x154   :  { %v2390_v5 = vpop.permute.xlu2 %564  ;;  %614 = vst.msk [vmem:[%s3169_s9 + $0x50] sm:$0xff] %vm81_vm0, %v577_v60  ;;  %v1330_v20 = vmul.f32 %v1170_v55, %v577_v60 }
 0x155   :  { %608 = vst.msk [vmem:[%s3169_s9 + $0x20] sm:$0xff] %vm81_vm0, %v2390_v5  ;;  %v1324_v28 = vmul.f32 %v1164_v26, %v2390_v5  ;;  %v2530_v5 = vperm.slane %v1644_v19, 1 }
 0x156   :  { %1206 = vrot.lane.b32.xlu2 %v523_v9, %s1645_s13  ;;  %1352 = vrot.lane.b32.xlu1 %v2173_v13, %s1645_s13  ;;  %1052 = vst.msk [vmem:[%s3168_s7 + $0x50] sm:$0xff] %vm81_vm0, %v1015_v33 }
 0x159   :  { %1368 = vrot.lane.b32.xlu0 %v2152_v44, %s1645_s13  ;;  %v1162_v44 = vsub.f32 1.0, %v1942_v45 }
 0x15b   :  { %v563_v21 = vpop.permute.xlu1 %562  ;;  %v1197_v13 = vpop.permute.xlu0 %1196  ;;  %v1226_v3 = vmul.f32 %v1181_v30, %v1162_v44  ;;  %v1322_v45 = vmul.f32 %v1162_v44, %v2339_v61 }
 0x15c   :  { %v1105_v42 = vpop.permute.xlu2 %1104  ;;  %607 = vst.msk [vmem:[%s3169_s9 + $0x18] sm:$0xff] %vm81_vm0, %v563_v21  ;;  %v1234_v12 = vmul.f32 %v1197_v13, %v1170_v55  ;;  %v1323_v17 = vmul.f32 %v1163_v46, %v563_v21  ;;  %v1175_v46 = vsub.f32 1.0, %v2353_v51 }
 0x15d   :  { %1148 = vst.msk [vmem:[%s3170_s8 + $0x20] sm:$0xff] %vm81_vm0, %v1105_v42 }
 0x15e   :  { %1272 = vrot.lane.b32.xlu2 %v1232_v54, %s1645_s13  ;;  %1258 = vrot.lane.b32.xlu1 %v1225_v2, %s1645_s13 }
 0x161   :  { %1274 = vrot.lane.b32.xlu0 %v1233_v63, %s1645_s13 }
 0x163   :  { %v1103_v1 = vpop.permute.xlu1 %1102  ;;  %v1119_v15 = vpop.permute.xlu0 %1118 }
 0x164   :  { %v1019_v7 = vpop.permute.xlu2 %1018  ;;  %1147 = vst.msk [vmem:[%s3170_s8 + $0x18] sm:$0xff] %vm81_vm0, %v1103_v1 }
 0x165   :  { %1054 = vst.msk [vmem:[%s3168_s7 + $0x60] sm:$0xff] %vm81_vm0, %v1019_v7 }
 0x166   :  { %1354 = vrot.lane.b32.xlu2 %v1321_v58, %s1645_s13  ;;  %1370 = vrot.lane.b32.xlu1 %v1329_v0, %s1645_s13  ;;  %1155 = vst.msk [vmem:[%s3170_s8 + $0x58] sm:$0xff] %vm81_vm0, %v1119_v15 }
 0x169   :  { %1356 = vrot.lane.b32.xlu0 %v1322_v45, %s1645_s13 }
 0x16b   :  { %v1017_v10 = vpop.permute.xlu1 %1016  ;;  %v1003_v6 = vpop.permute.xlu0 %1002 }
 0x16c   :  { %v1201_v11 = vpop.permute.xlu2 %1200  ;;  %1053 = vst.msk [vmem:[%s3168_s7 + $0x58] sm:$0xff] %vm81_vm0, %v1017_v10 }
 0x16d   :  { %1046 = vst.msk [vmem:[%s3168_s7 + $0x20] sm:$0xff] %vm81_vm0, %v1003_v6  ;;  %v1236_v35 = vmul.f32 %v1201_v11, %v1172_v41 }
 0x16e   :  { %1260 = vrot.lane.b32.xlu2 %v1226_v3, %s1645_s13  ;;  %1276 = vrot.lane.b32.xlu1 %v1234_v12, %s1645_s13 }
 0x171   :  { %1262 = vrot.lane.b32.xlu0 %v1227_v4, %s1645_s13 }
 0x173   :  { %v1199_v22 = vpop.permute.xlu1 %1198  ;;  %v1185_v38 = vpop.permute.xlu0 %1184 }
 0x174   :  { %v1235_v23 = vmul.f32 %v1199_v22, %v1171_v16  ;;  %v1228_v24 = vmul.f32 %v1185_v38, %v1164_v26  ;;  %v1167_v38 = vsub.f32 1.0, %v2317_v27 }
 0x176   :  { %1372 = vrot.lane.b32.xlu2 %v1330_v20, %s1645_s13  ;;  %1358 = vrot.lane.b32.xlu1 %v1323_v17, %s1645_s13 }
 0x178   :  { %v567_v8 = vpop.permute.xlu2 %566 }
 0x179   :  { %609 = vst.msk [vmem:[%s3169_s9 + $0x28] sm:$0xff] %vm81_vm0, %v567_v8  ;;  %1374 = vrot.lane.b32.xlu0 %v1331_v49, %s1645_s13  ;;  %v1325_v14 = vmul.f32 %v1165_v37, %v567_v8 }
 0x17b   :  { %v1121_v52 = vpop.permute.xlu1 %1120  ;;  %v581_v36 = vpop.permute.xlu0 %580 }
 0x17c   :  { %1156 = vst.msk [vmem:[%s3170_s8 + $0x60] sm:$0xff] %vm81_vm0, %v1121_v52  ;;  %v1332_v61 = vmul.f32 %v1172_v41, %v581_v36 }
 0x17d   :  { %616 = vst.msk [vmem:[%s3169_s9 + $0x60] sm:$0xff] %vm81_vm0, %v581_v36 }
 0x17e   :  { %1278 = vrot.lane.b32.xlu2 %v1235_v23, %s1645_s13  ;;  %1264 = vrot.lane.b32.xlu1 %v1228_v24, %s1645_s13  ;;  %v1174_v24 = vsub.f32 1.0, %v2282_v53 }
 0x180   :  { %v1123_v25 = vpop.permute.xlu2 %1122  ;;  %v164_v54 = vpop.f32.mrf.mxu1 }
 0x181   :  { %1157 = vst.msk [vmem:[%s3170_s8 + $0x68] sm:$0xff] %vm81_vm0, %v1123_v25  ;;  %1280 = vrot.lane.b32.xlu0 %v1236_v35, %s1645_s13  ;;  %v2534_v60 = vadd.f32 %v164_v54, %v2530_v5 }
 0x183   :  { %v1005_v59 = vpop.permute.xlu1 %1004  ;;  %v1107_v47 = vpop.permute.xlu0 %1106  ;;  %v1488_v42 = vmul.f32 -1.442695, %v2534_v60 }
 0x184   :  { %1047 = vst.msk [vmem:[%s3168_s7 + $0x28] sm:$0xff] %vm81_vm0, %v1005_v59 }
 0x185   :  { %1149 = vst.msk [vmem:[%s3170_s8 + $0x28] sm:$0xff] %vm81_vm0, %v1107_v47  ;;  %1580 = vpow2.f32 %v1488_v42 }
 0x186   :  { %1360 = vrot.lane.b32.xlu2 %v1324_v28, %s1645_s13  ;;  %1376 = vrot.lane.b32.xlu1 %v1332_v61, %s1645_s13  ;;  %v184_v33 = vpop.f32.mrf.mxu3 }
 0x187   :  { %v2537_v2 = vadd.f32 %v184_v33, %v2530_v5 }
 0x188   :  { %v1007_v43 = vpop.permute.xlu2 %1006  ;;  %v166_v63 = vpop.f32.mrf.mxu1 }
 0x189   :  { %1048 = vst.msk [vmem:[%s3168_s7 + $0x30] sm:$0xff] %vm81_vm0, %v1007_v43  ;;  %1362 = vrot.lane.b32.xlu0 %v1325_v14, %s1645_s13  ;;  %v1496_v58 = vmul.f32 -1.442695, %v2537_v2  ;;  %v2555_v0 = vadd.f32 %v166_v63, %v2530_v5 }
 0x18b   :  { %v1021_v34 = vpop.permute.xlu0 %1020  ;;  %1582 = vpow2.f32 %v1496_v58  ;;  %v1581_v3 = vpop.eup %1580  ;;  %v1489_v1 = vmul.f32 -1.442695, %v2555_v0 }
 0x18c   :  { %1055 = vst.msk [vmem:[%s3168_s7 + $0x68] sm:$0xff] %vm81_vm0, %v1021_v34  ;;  %v668_v45 = vadd.f32 1.0, %v1581_v3 }
 0x18d   :  { %1584 = vpow2.f32 %v1489_v1 }
 0x18e   :  { %v186_v44 = vpop.f32.mrf.mxu3  ;;  %1586 = vrcp.f32 %v668_v45  ;;  %vm689_vm5 = vweird.f32 %v668_v45  ;;  %v693_v25 = vand.u32 2147483647, %v668_v45  ;;  %v695_v41 = vand.u32 2147483648, %v668_v45 }
 0x18f   :  { %v2563_v15 = vadd.f32 %v186_v44, %v2530_v5 }
 0x190   :  { %v1189_v40 = vpop.permute.xlu2 %1188  ;;  %v1187_v50 = vpop.permute.xlu1 %1186  ;;  %vm2628_vm10 = vcmp.eq.f32.partialorder %v693_v25, 8.507059e+37  ;;  %v696_v48 = vor.u32 1.1754944e-38, %v695_v41 }
 0x191   :  { %v1229_v57 = vmul.f32 %v1187_v50, %v1165_v37  ;;  %v1230_v32 = vmul.f32 %v1189_v40, %v1166_v18  ;;  %v1583_v55 = vpop.eup %1582  ;;  %v1497_v11 = vmul.f32 -1.442695, %v2563_v15  ;;  %v169_v6 = vpop.f32.mrf.mxu1 }
 0x192   :  { %v2565_v12 = vadd.f32 1.0, %v1583_v55  ;;  %v2579_v4 = vadd.f32 %v169_v6, %v2530_v5 }
 0x193   :  { %1266 = vrot.lane.b32.xlu2 %v1229_v57, %s1645_s13  ;;  %1268 = vrot.lane.b32.xlu0 %v1230_v32, %s1645_s13  ;;  %v1203_v30 = vpop.permute.xlu0 %1202  ;;  %v1585_v16 = vpop.eup %1584 }
 0x194   :  { %v1237_v39 = vmul.f32 %v1203_v30, %v1173_v31  ;;  %1588 = vrcp.f32 %v2565_v12  ;;  %v1490_v23 = vmul.f32 -1.442695, %v2579_v4  ;;  %v2588_v49 = vpop.eup %1586  ;;  %v2591_v52 = vadd.f32 1.0, %v1585_v16 }
 0x195   :  { %1590 = vpow2.f32 %v1497_v11  ;;  %v685_v28 = vmul.f32 %v2588_v49, %v668_v45  ;;  %vm809_vm6 = vweird.f32 %v2565_v12  ;;  %v813_v47 = vand.u32 2147483647, %v2565_v12 }
 0x196   :  { %1282 = vrot.lane.b32.xlu1 %v1237_v39, %s1645_s13  ;;  %v189_v8 = vpop.f32.mrf.mxu3  ;;  %1592 = vpow2.f32 %v1490_v23  ;;  %vm690_vm7 = vweird.f32 %v2588_v49  ;;  %v815_v40 = vand.u32 2147483648, %v2565_v12  ;;  %vm704_vm13 = vweird.f32 %v2591_v52 }
 0x197   :  { %v2586_v26 = vadd.f32 %v189_v8, %v2530_v5  ;;  %1594 = vrcp.f32 %v2591_v52  ;;  %v686_v14 = vsub.f32 1.0, %v685_v28  ;;  %vm2624_vm9 = vmor %vm689_vm5, %vm690_vm7  ;;  %vm2647_vm12 = vcmp.eq.f32.partialorder %v813_v47, 8.507059e+37 }
 0x198   :  { %v2509_v9 = vpop.permute.xlu2 %584  ;;  %v2518_v56 = vpop.permute.xlu1 %582  ;;  %v816_v58 = vor.u32 1.1754944e-38, %v815_v40  ;;  %v710_v63 = vand.u32 2147483648, %v2591_v52 }
 0x199   :  { %618 = vst.msk [vmem:[%s3169_s9 + $0x70] sm:$0xff] %vm81_vm0, %v2509_v9  ;;  %v1498_v35 = vmul.f32 -1.442695, %v2586_v26  ;;  %v171_v57 = vpop.f32.mrf.mxu1  ;;  %v1334_v32 = vmul.f32 %v1174_v24, %v2509_v9  ;;  %v687_v30 = vmul.f32 %v2588_v49, %v686_v14 }
 0x19a   :  { %617 = vst.msk [vmem:[%s3169_s9 + $0x68] sm:$0xff] %vm81_vm0, %v2518_v56  ;;  %v2593_v36 = vpop.eup %1588  ;;  %v2621_v39 = vadd.f32 %v171_v57, %v2530_v5  ;;  %v711_v27 = vor.u32 1.1754944e-38, %v710_v63 }
 0x19b   :  { %v569_v13 = vpop.permute.xlu0 %568  ;;  %v1591_v61 = vpop.eup %1590  ;;  %v805_v53 = vmul.f32 %v2593_v36, %v2565_v12  ;;  %vm810_vm8 = vweird.f32 %v2593_v36  ;;  %1596 = vpow2.f32 %v1498_v35 }
 0x19c   :  { %v1326_v29 = vmul.f32 %v1166_v18, %v569_v13  ;;  %610 = vst.msk [vmem:[%s3169_s9 + $0x30] sm:$0xff] %vm81_vm0, %v569_v13  ;;  %v2610_v34 = vadd.f32 1.0, %v1591_v61  ;;  %v2615_v18 = vmul.f32 %v1173_v31, %v2518_v56  ;;  %v1593_v31 = vpop.eup %1592  ;;  %v688_v56 = vadd.f32 %v2588_v49, %v687_v30  ;;  %vm2643_vm11 = vmor %vm809_vm6, %vm810_vm8 }
 0x19d   :  { %v806_v50 = vsub.f32 1.0, %v805_v53  ;;  %v1491_v55 = vmul.f32 -1.442695, %v2621_v39 }
 0x19e   :  { %1364 = vrot.lane.b32.xlu1 %v1326_v29, %s1645_s13  ;;  %1598 = vrcp.f32 %v2610_v34  ;;  %v708_v29 = vand.u32 2147483647, %v2591_v52  ;;  %v692_v44 = vsel %vm2624_vm9, %v2588_v49, %v688_v56  ;;  %v828_v1 = vand.u32 2147483647, %v2610_v34  ;;  %v191_v45 = vpop.f32.mrf.mxu3 }
 0x19f   :  { %v807_v9 = vmul.f32 %v2593_v36, %v806_v50  ;;  %vm824_vm1 = vweird.f32 %v2610_v34  ;;  %v2714_v35 = vadd.f32 %v191_v45, %v2530_v5 }
 0x1a0   :  { %v1111_v62 = vpop.permute.xlu2 %1110  ;;  %v1109_v21 = vpop.permute.xlu1 %1108  ;;  %vm2689_vm15 = vcmp.eq.f32.partialorder %v708_v29, 8.507059e+37  ;;  %vm2709_vm2 = vcmp.eq.f32.partialorder %v828_v1, 8.507059e+37 }
 0x1a1   :  { %1151 = vst.msk [vmem:[%s3170_s8 + $0x38] sm:$0xff] %vm81_vm0, %v1111_v62  ;;  %v808_v13 = vadd.f32 %v2593_v36, %v807_v9  ;;  %v174_v61 = vpop.f32.mrf.mxu1  ;;  %v1499_v14 = vmul.f32 -1.442695, %v2714_v35 }
 0x1a2   :  { %1150 = vst.msk [vmem:[%s3170_s8 + $0x30] sm:$0xff] %vm81_vm0, %v1109_v21  ;;  %v2652_v21 = vpop.eup %1594  ;;  %v2734_v40 = vadd.f32 %v174_v61, %v2530_v5 }
 0x1a3   :  { %v1125_v10 = vpop.permute.xlu0 %1124  ;;  %v700_v3 = vmul.f32 %v2652_v21, %v2591_v52  ;;  %v1597_v12 = vpop.eup %1596  ;;  %v812_v6 = vsel %vm2643_vm11, %v2593_v36, %v808_v13  ;;  %vm705_vm14 = vweird.f32 %v2652_v21 }
 0x1a4   :  { %1158 = vst.msk [vmem:[%s3170_s8 + $0x70] sm:$0xff] %vm81_vm0, %v1125_v10  ;;  %v697_v10 = vsel %vm2628_vm10, %v696_v48, %v692_v44  ;;  %v817_v23 = vsel %vm2647_vm12, %v816_v58, %v812_v6  ;;  %v2685_v49 = vpop.eup %1598  ;;  %vm2724_vm3 = vmor %vm704_vm13, %vm705_vm14  ;;  %v1492_v9 = vmul.f32 -1.442695, %v2734_v40 }
 0x1a5   :  { %v701_v25 = vsub.f32 1.0, %v700_v3  ;;  %vm825_vm4 = vweird.f32 %v2685_v49 }
 0x1a6   :  { %v194_v30 = vpop.f32.mrf.mxu3  ;;  %vm2747_vm6 = vmor %vm824_vm1, %vm825_vm4 }
 0x1a7   :  { %v702_v28 = vmul.f32 %v2652_v21, %v701_v25  ;;  %v2769_v13 = vadd.f32 %v194_v30, %v2530_v5 }
 0x1a8   :  { %v1025_v7 = vpop.permute.xlu2 %1024  ;;  %v1023_v20 = vpop.permute.xlu1 %1022 }
 0x1a9   :  { %1057 = vst.msk [vmem:[%s3168_s7 + $0x78] sm:$0xff] %vm81_vm0, %v1025_v7  ;;  %v2657_v7 = vadd.f32 1.0, %v1593_v31  ;;  %v1500_v6 = vmul.f32 -1.442695, %v2769_v13 }
 0x1aa   :  { %1056 = vst.msk [vmem:[%s3168_s7 + $0x70] sm:$0xff] %vm81_vm0, %v1023_v20 }
 0x1ab   :  { %v1009_v59 = vpop.permute.xlu0 %1008  ;;  %1600 = vrcp.f32 %v2657_v7  ;;  %vm719_vm5 = vweird.f32 %v2657_v7  ;;  %v723_v57 = vand.u32 2147483647, %v2657_v7 }
 0x1ac   :  { %1049 = vst.msk [vmem:[%s3168_s7 + $0x38] sm:$0xff] %vm81_vm0, %v1009_v59  ;;  %1602 = vpow2.f32 %v1491_v55  ;;  %v176_v55 = vpop.f32.mrf.mxu1 }
 0x1ad   :  { %vm2777_vm8 = vcmp.eq.f32.partialorder %v723_v57, 8.507059e+37 }
 0x1b0   :  { %v1207_v17 = vpop.permute.xlu2 %1206  ;;  %v1205_v43 = vpop.permute.xlu1 %1204 }
 0x1b1   :  { %v1239_v22 = vmul.f32 %v1207_v17, %v1175_v46  ;;  %v1238_v37 = vmul.f32 %v1205_v43, %v1174_v24  ;;  %v830_v17 = vand.u32 2147483648, %v2610_v34  ;;  %v932_v24 = vmul.f32 %v817_v23, %v2537_v2  ;;  %v1601_v47 = vpop.eup %1600 }
 0x1b2   :  { %v2701_v2 = vadd.f32 1.0, %v1597_v12  ;;  %v715_v50 = vmul.f32 %v1601_v47, %v2657_v7  ;;  %vm720_vm7 = vweird.f32 %v1601_v47  ;;  %v1603_v31 = vpop.eup %1602 }
 0x1b3   :  { %1286 = vrot.lane.b32.xlu0 %v1239_v22, %s1645_s13  ;;  %1284 = vrot.lane.b32.xlu2 %v1238_v37, %s1645_s13  ;;  %v1191_v20 = vpop.permute.xlu0 %1190  ;;  %v924_v22 = vmul.f32 %v697_v10, %v2534_v60  ;;  %v820_v60 = vmul.f32 %v2685_v49, %v2610_v34  ;;  %948 = vst.msk [vmem:[%s3172_s10 + $0x40] sm:$0xff] %vm81_vm0, %v932_v24  ;;  %v831_v53 = vor.u32 1.1754944e-38, %v830_v17  ;;  %vm2790_vm9 = vmor %vm719_vm5, %vm720_vm7 }
 0x1b4   :  { %v1231_v16 = vmul.f32 %v1191_v20, %v1167_v38  ;;  %1604 = vrcp.f32 %v2701_v2  ;;  %v703_v37 = vadd.f32 %v2652_v21, %v702_v28  ;;  %v716_v42 = vsub.f32 1.0, %v715_v50  ;;  %v179_v48 = vpop.f32.mrf.mxu1 }
 0x1b5   :  { %940 = vst.msk [vmem:[%s3172_s10] sm:$0xff] %vm81_vm0, %v924_v22  ;;  %v821_v59 = vsub.f32 1.0, %v820_v60  ;;  %1606 = vpow2.f32 %v1499_v14  ;;  %vm839_vm10 = vweird.f32 %v2701_v2  ;;  %v2806_v17 = vadd.f32 %v176_v55, %v2530_v5 }
 0x1b6   :  { %1270 = vrot.lane.b32.xlu1 %v1231_v16, %s1645_s13  ;;  %v707_v33 = vsel %vm2724_vm3, %v2652_v21, %v703_v37  ;;  %v2766_v21 = vadd.f32 1.0, %v1603_v31  ;;  %1608 = vpow2.f32 %v1492_v9  ;;  %v717_v29 = vmul.f32 %v1601_v47, %v716_v42 }
 0x1b7   :  { %v822_v52 = vmul.f32 %v2685_v49, %v821_v59  ;;  %v712_v34 = vsel %vm2689_vm15, %v711_v27, %v707_v33 }
 0x1b8   :  { %v1273_v19 = vpop.permute.xlu2 %1272  ;;  %v571_v11 = vpop.permute.xlu1 %570  ;;  %v925_v58 = vmul.f32 %v712_v34, %v2555_v0  ;;  %1610 = vrcp.f32 %v2766_v21  ;;  %v718_v12 = vadd.f32 %v1601_v47, %v717_v29  ;;  %v738_v61 = vand.u32 2147483647, %v2766_v21 }
 0x1b9   :  { %1312 = vst.msk [vmem:[%s3171_s5 + $0x40] sm:$0xff] %vm81_vm0, %v1273_v19  ;;  %v1327_v8 = vmul.f32 %v1167_v38, %v571_v11  ;;  %v823_v62 = vadd.f32 %v2685_v49, %v822_v52  ;;  %1612 = vpow2.f32 %v1500_v6  ;;  %vm734_vm14 = vweird.f32 %v2766_v21 }
 0x1ba   :  { %611 = vst.msk [vmem:[%s3169_s9 + $0x38] sm:$0xff] %vm81_vm0, %v571_v11  ;;  %v1605_v51 = vpop.eup %1604  ;;  %v845_v11 = vand.u32 2147483648, %v2701_v2  ;;  %vm2858_vm1 = vcmp.eq.f32.partialorder %v738_v61, 8.507059e+37 }
 0x1bb   :  { %1380 = vrot.lane.b32.xlu0 %v1334_v32, %s1645_s13  ;;  %1366 = vrot.lane.b32.xlu2 %v1327_v8, %s1645_s13  ;;  %v725_v32 = vand.u32 2147483648, %v2657_v7  ;;  %v587_v54 = vpop.permute.xlu0 %586  ;;  %941 = vst.msk [vmem:[%s3172_s10 + $0x8] sm:$0xff] %vm81_vm0, %v925_v58  ;;  %v835_v1 = vmul.f32 %v1605_v51, %v2701_v2  ;;  %v843_v7 = vand.u32 2147483647, %v2701_v2  ;;  %v1607_v20 = vpop.eup %1606  ;;  %vm840_vm11 = vweird.f32 %v1605_v51 }
 0x1bc   :  { %v1335_v56 = vmul.f32 %v1175_v46, %v587_v54  ;;  %619 = vst.msk [vmem:[%s3169_s9 + $0x78] sm:$0xff] %vm81_vm0, %v587_v54  ;;  %v827_v46 = vsel %vm2747_vm6, %v2685_v49, %v823_v62  ;;  %v2814_v8 = vadd.f32 1.0, %v1607_v20  ;;  %v1609_v16 = vpop.eup %1608  ;;  %vm2825_vm12 = vmor %vm839_vm10, %vm840_vm11  ;;  %v846_v27 = vor.u32 1.1754944e-38, %v845_v11  ;;  %v196_v2 = vpop.f32.mrf.mxu3 }
 0x1bd   :  { %v726_v0 = vor.u32 1.1754944e-38, %v725_v32  ;;  %v832_v44 = vsel %vm2709_vm2, %v831_v53, %v827_v46  ;;  %v836_v10 = vsub.f32 1.0, %v835_v1  ;;  %vm844_vm13 = vcmp.eq.f32.partialorder %v843_v7, 8.507059e+37 }
 0x1be   :  { %1382 = vrot.lane.b32.xlu1 %v1335_v56, %s1645_s13  ;;  %v933_v45 = vmul.f32 %v832_v44, %v2563_v15  ;;  %v722_v15 = vsel %vm2790_vm9, %v1601_v47, %v718_v12  ;;  %1614 = vrcp.f32 %v2814_v8  ;;  %v1611_v60 = vpop.eup %1610  ;;  %v2834_v28 = vadd.f32 1.0, %v1609_v16 }
 0x1bf   :  { %v727_v49 = vsel %vm2777_vm8, %v726_v0, %v722_v15  ;;  %v837_v24 = vmul.f32 %v1605_v51, %v836_v10  ;;  %v730_v41 = vmul.f32 %v1611_v60, %v2766_v21  ;;  %v2844_v43 = vadd.f32 %v196_v2, %v2530_v5  ;;  %v1613_v52 = vpop.eup %1612 }
 0x1c0   :  { %v1355_v38 = vpop.permute.xlu2 %1354  ;;  %v1127_v19 = vpop.permute.xlu1 %1126  ;;  %949 = vst.msk [vmem:[%s3172_s10 + $0x48] sm:$0xff] %vm81_vm0, %v933_v45  ;;  %v926_v25 = vmul.f32 %v727_v49, %v2579_v4  ;;  %v1493_v4 = vmul.f32 -1.442695, %v2806_v17  ;;  %v740_v47 = vand.u32 2147483648, %v2766_v21  ;;  %1616 = vrcp.f32 %v2834_v28 }
 0x1c1   :  { %1401 = vst.msk [vmem:[%s3173_s6 + $0x8] sm:$0xff] %vm81_vm0, %v1355_v38  ;;  %v838_v38 = vadd.f32 %v1605_v51, %v837_v24  ;;  %v731_v14 = vsub.f32 1.0, %v730_v41  ;;  %vm735_vm15 = vweird.f32 %v1611_v60  ;;  %v860_v57 = vand.u32 2147483648, %v2814_v8 }
 0x1c2   :  { %1159 = vst.msk [vmem:[%s3170_s8 + $0x78] sm:$0xff] %vm81_vm0, %v1127_v19  ;;  %1618 = vpow2.f32 %v1493_v4  ;;  %v1501_v32 = vmul.f32 -1.442695, %v2844_v43  ;;  %v2862_v33 = vadd.f32 1.0, %v1613_v52  ;;  %vm2870_vm2 = vmor %vm734_vm14, %vm735_vm15  ;;  %v741_v56 = vor.u32 1.1754944e-38, %v740_v47 }
 0x1c3   :  { %1378 = vrot.lane.b32.xlu2 %v2615_v18, %s1645_s13  ;;  %v1257_v23 = vpop.permute.xlu0 %1256  ;;  %942 = vst.msk [vmem:[%s3172_s10 + $0x10] sm:$0xff] %vm81_vm0, %v926_v25  ;;  %v842_v59 = vsel %vm2825_vm12, %v1605_v51, %v838_v38  ;;  %v732_v19 = vmul.f32 %v1611_v60, %v731_v14  ;;  %v2876_v62 = vadd.f32 %v179_v48, %v2530_v5  ;;  %vm854_vm3 = vweird.f32 %v2814_v8 }
 0x1c4   :  { %1304 = vst.msk [vmem:[%s3171_s5] sm:$0xff] %vm81_vm0, %v1257_v23  ;;  %v847_v37 = vsel %vm844_vm13, %v846_v27, %v842_v59  ;;  %v1615_v30 = vpop.eup %1614  ;;  %1620 = vpow2.f32 %v1501_v32  ;;  %v858_v58 = vand.u32 2147483647, %v2814_v8  ;;  %v861_v46 = vor.u32 1.1754944e-38, %v860_v57  ;;  %v199_v10 = vpop.f32.mrf.mxu3 }
 0x1c5   :  { %v934_v50 = vmul.f32 %v847_v37, %v2586_v26  ;;  %v850_v34 = vmul.f32 %v1615_v30, %v2814_v8  ;;  %v733_v42 = vadd.f32 %v1611_v60, %v732_v19  ;;  %1622 = vrcp.f32 %v2862_v33  ;;  %v181_v37 = vpop.f32.mrf.mxu1 }
 0x1c6   :  { %v1617_v21 = vpop.eup %1616  ;;  %vm855_vm4 = vweird.f32 %v1615_v30  ;;  %v1494_v29 = vmul.f32 -1.442695, %v2876_v62  ;;  %v753_v44 = vand.u32 2147483647, %v2834_v28  ;;  %vm749_vm5 = vweird.f32 %v2834_v28 }
 0x1c7   :  { %950 = vst.msk [vmem:[%s3172_s10 + $0x50] sm:$0xff] %vm81_vm0, %v934_v50  ;;  %v851_v51 = vsub.f32 1.0, %v850_v34  ;;  %v737_v63 = vsel %vm2870_vm2, %v1611_v60, %v733_v42  ;;  %v745_v0 = vmul.f32 %v1617_v21, %v2834_v28  ;;  %vm2901_vm6 = vmor %vm854_vm3, %vm855_vm4  ;;  %vm750_vm7 = vweird.f32 %v1617_v21 }
 0x1c8   :  { %v1261_v3 = vpop.permute.xlu2 %1260  ;;  %v1353_v22 = vpop.permute.xlu1 %1352  ;;  %v742_v1 = vsel %vm2858_vm1, %v741_v56, %v737_v63  ;;  %1624 = vpow2.f32 %v1494_v29  ;;  %vm2907_vm8 = vcmp.eq.f32.partialorder %v858_v58, 8.507059e+37  ;;  %vm2922_vm9 = vcmp.eq.f32.partialorder %v753_v44, 8.507059e+37  ;;  %vm2932_vm10 = vmor %vm749_vm5, %vm750_vm7 }
 0x1c9   :  { %1306 = vst.msk [vmem:[%s3171_s5 + $0x10] sm:$0xff] %vm81_vm0, %v1261_v3  ;;  %v755_v3 = vand.u32 2147483648, %v2834_v28  ;;  %v1619_v18 = vpop.eup %1618  ;;  %v852_v55 = vmul.f32 %v1615_v30, %v851_v51  ;;  %v927_v45 = vmul.f32 %v742_v1, %v2621_v39  ;;  %v746_v11 = vsub.f32 1.0, %v745_v0 }
 0x1ca   :  { %1400 = vst.msk [vmem:[%s3173_s6] sm:$0xff] %vm81_vm0, %v1353_v22  ;;  %v2905_v20 = vadd.f32 1.0, %v1619_v18  ;;  %v1621_v6 = vpop.eup %1620  ;;  %v2916_v39 = vadd.f32 %v199_v10, %v2530_v5  ;;  %vm869_vm11 = vweird.f32 %v2862_v33  ;;  %v873_v38 = vand.u32 2147483647, %v2862_v33 }
 0x1cb   :  { %v1369_v9 = vpop.permute.xlu0 %1368  ;;  %v853_v15 = vadd.f32 %v1615_v30, %v852_v55  ;;  %v1623_v8 = vpop.eup %1622  ;;  %943 = vst.msk [vmem:[%s3172_s10 + $0x18] sm:$0xff] %vm81_vm0, %v927_v45  ;;  %v747_v22 = vmul.f32 %v1617_v21, %v746_v11  ;;  %v756_v49 = vor.u32 1.1754944e-38, %v755_v3  ;;  %v875_v28 = vand.u32 2147483648, %v2862_v33 }
 0x1cc   :  { %1408 = vst.msk [vmem:[%s3173_s6 + $0x40] sm:$0xff] %vm81_vm0, %v1369_v9  ;;  %1626 = vrcp.f32 %v2905_v20  ;;  %v865_v60 = vmul.f32 %v1623_v8, %v2862_v33  ;;  %v2946_v41 = vadd.f32 1.0, %v1621_v6  ;;  %vm870_vm12 = vweird.f32 %v1623_v8  ;;  %v201_v56 = vpop.f32.mrf.mxu3 }
 0x1cd   :  { %v857_v24 = vsel %vm2901_vm6, %v1615_v30, %v853_v15  ;;  %v748_v2 = vadd.f32 %v1617_v21, %v747_v22  ;;  %v1502_v47 = vmul.f32 -1.442695, %v2916_v39  ;;  %vm2968_vm13 = vmor %vm869_vm11, %vm870_vm12  ;;  %v876_v19 = vor.u32 1.1754944e-38, %v875_v28 }
 0x1ce   :  { %v862_v4 = vsel %vm2907_vm8, %v861_v46, %v857_v24  ;;  %v1625_v61 = vpop.eup %1624  ;;  %1628 = vrcp.f32 %v2946_v41  ;;  %v2973_v48 = vadd.f32 %v181_v37, %v2530_v5  ;;  %vm2975_vm14 = vcmp.eq.f32.partialorder %v873_v38, 8.507059e+37 }
 0x1cf   :  { %v935_v59 = vmul.f32 %v862_v4, %v2714_v35  ;;  %v752_v14 = vsel %vm2932_vm10, %v1617_v21, %v748_v2  ;;  %v2963_v50 = vadd.f32 1.0, %v1625_v61  ;;  %1630 = vpow2.f32 %v1502_v47 }
 0x1d0   :  { %v1373_v53 = vpop.permute.xlu2 %1372  ;;  %v1259_v26 = vpop.permute.xlu1 %1258  ;;  %v757_v35 = vsel %vm2922_vm9, %v756_v49, %v752_v14  ;;  %v768_v33 = vand.u32 2147483647, %v2905_v20  ;;  %vm764_vm15 = vweird.f32 %v2905_v20  ;;  %v770_v31 = vand.u32 2147483648, %v2905_v20 }
 0x1d1   :  { %1410 = vst.msk [vmem:[%s3173_s6 + $0x50] sm:$0xff] %vm81_vm0, %v1373_v53  ;;  %v866_v53 = vsub.f32 1.0, %v865_v60  ;;  %v928_v32 = vmul.f32 %v757_v35, %v2734_v40  ;;  %1632 = vrcp.f32 %v2963_v50  ;;  %v1495_v51 = vmul.f32 -1.442695, %v2973_v48 }
 0x1d2   :  { %1305 = vst.msk [vmem:[%s3171_s5 + $0x8] sm:$0xff] %vm81_vm0, %v1259_v26  ;;  %v1627_v57 = vpop.eup %1626  ;;  %v2996_v46 = vadd.f32 %v201_v56, %v2530_v5  ;;  %v888_v0 = vand.u32 2147483647, %v2946_v41  ;;  %v890_v44 = vand.u32 2147483648, %v2946_v41  ;;  %vm3011_vm2 = vcmp.eq.f32.partialorder %v768_v33, 8.507059e+37 }
 0x1d3   :  { %v1275_v36 = vpop.permute.xlu0 %1274  ;;  %951 = vst.msk [vmem:[%s3172_s10 + $0x58] sm:$0xff] %vm81_vm0, %v935_v59  ;;  %v867_v52 = vmul.f32 %v1623_v8, %v866_v53  ;;  %v760_v40 = vmul.f32 %v1627_v57, %v2905_v20  ;;  %vm765_vm1 = vweird.f32 %v1627_v57  ;;  %vm884_vm4 = vweird.f32 %v2946_v41 }
 0x1d4   :  { %1313 = vst.msk [vmem:[%s3171_s5 + $0x48] sm:$0xff] %vm81_vm0, %v1275_v36  ;;  %v1629_v29 = vpop.eup %1628  ;;  %vm3019_vm3 = vmor %vm764_vm15, %vm765_vm1  ;;  %1634 = vpow2.f32 %v1495_v51  ;;  %v1503_v12 = vmul.f32 -1.442695, %v2996_v46  ;;  %vm3029_vm6 = vcmp.eq.f32.partialorder %v888_v0, 8.507059e+37  ;;  %v891_v15 = vor.u32 1.1754944e-38, %v890_v44 }
 0x1d5   :  { %v868_v26 = vadd.f32 %v1623_v8, %v867_v52  ;;  %944 = vst.msk [vmem:[%s3172_s10 + $0x20] sm:$0xff] %vm81_vm0, %v928_v32  ;;  %v761_v21 = vsub.f32 1.0, %v760_v40  ;;  %v880_v1 = vmul.f32 %v1629_v29, %v2946_v41  ;;  %v1631_v55 = vpop.eup %1630  ;;  %vm885_vm5 = vweird.f32 %v1629_v29 }
 0x1d6   :  { %v682_v10 = vadd.f32 1.0, %v1631_v55  ;;  %1636 = vpow2.f32 %v1503_v12  ;;  %vm779_vm7 = vweird.f32 %v2963_v50  ;;  %vm3041_vm8 = vmor %vm884_vm4, %vm885_vm5  ;;  %v783_v24 = vand.u32 2147483647, %v2963_v50 }
 0x1d7   :  { %v872_v34 = vsel %vm2968_vm13, %v1623_v8, %v868_v26  ;;  %v762_v5 = vmul.f32 %v1627_v57, %v761_v21  ;;  %v881_v11 = vsub.f32 1.0, %v880_v1  ;;  %v1633_v20 = vpop.eup %1632 }
 0x1d8   :  { %v1279_v7 = vpop.permute.xlu2 %1278  ;;  %v1371_v25 = vpop.permute.xlu1 %1370  ;;  %v877_v63 = vsel %vm2975_vm14, %v876_v19, %v872_v34  ;;  %v775_v22 = vmul.f32 %v1633_v20, %v2963_v50  ;;  %1638 = vrcp.f32 %v682_v10  ;;  %vm780_vm9 = vweird.f32 %v1633_v20 }
 0x1d9   :  { %1315 = vst.msk [vmem:[%s3171_s5 + $0x58] sm:$0xff] %vm81_vm0, %v1279_v7  ;;  %v936_v3 = vmul.f32 %v877_v63, %v2769_v13  ;;  %v771_v13 = vor.u32 1.1754944e-38, %v770_v31  ;;  %v763_v7 = vadd.f32 %v1627_v57, %v762_v5  ;;  %v882_v8 = vmul.f32 %v1629_v29, %v881_v11  ;;  %vm781_vm10 = vmor %vm779_vm7, %vm780_vm9 }
 0x1da   :  { %1409 = vst.msk [vmem:[%s3173_s6 + $0x48] sm:$0xff] %vm81_vm0, %v1371_v25  ;;  %v785_v25 = vand.u32 2147483648, %v2963_v50  ;;  %v776_v4 = vsub.f32 1.0, %v775_v22  ;;  %v1635_v2 = vpop.eup %1634  ;;  %vm784_vm11 = vcmp.eq.f32.partialorder %v783_v24, 8.507059e+37  ;;  %vm899_vm12 = vweird.f32 %v682_v10 }
 0x1db   :  { %v1357_v58 = vpop.permute.xlu0 %1356  ;;  %952 = vst.msk [vmem:[%s3172_s10 + $0x60] sm:$0xff] %vm81_vm0, %v936_v3  ;;  %v767_v16 = vsel %vm3019_vm3, %v1627_v57, %v763_v7  ;;  %v883_v27 = vadd.f32 %v1629_v29, %v882_v8  ;;  %v675_v41 = vadd.f32 1.0, %v1635_v2  ;;  %v905_v50 = vand.u32 2147483648, %v682_v10 }
 0x1dc   :  { %1402 = vst.msk [vmem:[%s3173_s6 + $0x10] sm:$0xff] %vm81_vm0, %v1357_v58  ;;  %v772_v23 = vsel %vm3011_vm2, %v771_v13, %v767_v16  ;;  %v1637_v61 = vpop.eup %1636  ;;  %v786_v53 = vor.u32 1.1754944e-38, %v785_v25 }
 0x1dd   :  { %v929_v36 = vmul.f32 %v772_v23, %v2806_v17  ;;  %v887_v28 = vsel %vm3041_vm8, %v1629_v29, %v883_v27  ;;  %v777_v17 = vmul.f32 %v1633_v20, %v776_v4  ;;  %1640 = vrcp.f32 %v675_v41 }
 0x1de   :  { %v892_v59 = vsel %vm3029_vm6, %v891_v15, %v887_v28  ;;  %v1639_v14 = vpop.eup %1638  ;;  %v683_v52 = vadd.f32 1.0, %v1637_v61  ;;  %v800_v31 = vand.u32 2147483648, %v675_v41  ;;  %vm794_vm1 = vweird.f32 %v675_v41 }
 0x1df   :  { %945 = vst.msk [vmem:[%s3172_s10 + $0x28] sm:$0xff] %vm81_vm0, %v929_v36  ;;  %v937_v47 = vmul.f32 %v892_v59, %v2844_v43  ;;  %v778_v37 = vadd.f32 %v1633_v20, %v777_v17  ;;  %v895_v32 = vmul.f32 %v1639_v14, %v682_v10  ;;  %vm900_vm13 = vweird.f32 %v1639_v14 }
 0x1e0   :  { %v1361_v54 = vpop.permute.xlu2 %1360  ;;  %v1277_v42 = vpop.permute.xlu1 %1276  ;;  %1642 = vrcp.f32 %v683_v52  ;;  %vm901_vm14 = vmor %vm899_vm12, %vm900_vm13  ;;  %v798_v21 = vand.u32 2147483647, %v675_v41  ;;  %v801_v29 = vor.u32 1.1754944e-38, %v800_v31  ;;  %vm914_vm3 = vweird.f32 %v683_v52 }
 0x1e1   :  { %1404 = vst.msk [vmem:[%s3173_s6 + $0x20] sm:$0xff] %vm81_vm0, %v1361_v54  ;;  %v782_v57 = vsel %vm781_vm10, %v1633_v20, %v778_v37  ;;  %v896_v19 = vsub.f32 1.0, %v895_v32  ;;  %v903_v54 = vand.u32 2147483647, %v682_v10  ;;  %v920_v3 = vand.u32 2147483648, %v683_v52 }
 0x1e2   :  { %1314 = vst.msk [vmem:[%s3171_s5 + $0x50] sm:$0xff] %vm81_vm0, %v1277_v42  ;;  %v787_v30 = vsel %vm784_vm11, %v786_v53, %v782_v57  ;;  %v918_v55 = vand.u32 2147483647, %v683_v52  ;;  %vm799_vm6 = vcmp.eq.f32.partialorder %v798_v21, 8.507059e+37 }
 0x1e3   :  { %v1263_v38 = vpop.permute.xlu0 %1262  ;;  %953 = vst.msk [vmem:[%s3172_s10 + $0x68] sm:$0xff] %vm81_vm0, %v937_v47  ;;  %v930_v43 = vmul.f32 %v787_v30, %v2876_v62  ;;  %v1641_v40 = vpop.eup %1640  ;;  %v897_v33 = vmul.f32 %v1639_v14, %v896_v19  ;;  %v906_v62 = vor.u32 1.1754944e-38, %v905_v50  ;;  %vm904_vm15 = vcmp.eq.f32.partialorder %v903_v54, 8.507059e+37 }
 0x1e4   :  { %1307 = vst.msk [vmem:[%s3171_s5 + $0x18] sm:$0xff] %vm81_vm0, %v1263_v38  ;;  %v790_v56 = vmul.f32 %v1641_v40, %v675_v41  ;;  %vm795_vm2 = vweird.f32 %v1641_v40  ;;  %v921_v11 = vor.u32 1.1754944e-38, %v920_v3  ;;  %vm919_vm8 = vcmp.eq.f32.partialorder %v918_v55, 8.507059e+37 }
 0x1e5   :  { %946 = vst.msk [vmem:[%s3172_s10 + $0x30] sm:$0xff] %vm81_vm0, %v930_v43  ;;  %v898_v34 = vadd.f32 %v1639_v14, %v897_v33  ;;  %vm3090_vm4 = vmor %vm794_vm1, %vm795_vm2 }
 0x1e6   :  { %v1643_v42 = vpop.eup %1642  ;;  %v791_v58 = vsub.f32 1.0, %v790_v56 }
 0x1e7   :  { %v902_v51 = vsel %vm901_vm14, %v1639_v14, %v898_v34  ;;  %v910_v63 = vmul.f32 %v1643_v42, %v683_v52  ;;  %vm915_vm5 = vweird.f32 %v1643_v42 }
 0x1e8   :  { %v1359_v60 = vpop.permute.xlu1 %1358  ;;  %v907_v0 = vsel %vm904_vm15, %v906_v62, %v902_v51  ;;  %v792_v44 = vmul.f32 %v1641_v40, %v791_v58  ;;  %vm916_vm7 = vmor %vm914_vm3, %vm915_vm5 }
 0x1e9   :  { %1403 = vst.msk [vmem:[%s3173_s6 + $0x18] sm:$0xff] %vm81_vm0, %v1359_v60  ;;  %v938_v5 = vmul.f32 %v907_v0, %v2916_v39  ;;  %v911_v1 = vsub.f32 1.0, %v910_v63 }
 0x1ea   :  { %v793_v12 = vadd.f32 %v1641_v40, %v792_v44 }
 0x1eb   :  { %v1375_v9 = vpop.permute.xlu0 %1374  ;;  %954 = vst.msk [vmem:[%s3172_s10 + $0x70] sm:$0xff] %vm81_vm0, %v938_v5  ;;  %v912_v39 = vmul.f32 %v1643_v42, %v911_v1 }
 0x1ec   :  { %1411 = vst.msk [vmem:[%s3173_s6 + $0x58] sm:$0xff] %vm81_vm0, %v1375_v9  ;;  %v797_v7 = vsel %vm3090_vm4, %v1641_v40, %v793_v12 }
 0x1ed   :  { %v1267_v35 = vpop.permute.xlu2 %1266  ;;  %v802_v10 = vsel %vm799_vm6, %v801_v29, %v797_v7  ;;  %v913_v20 = vadd.f32 %v1643_v42, %v912_v39 }
 0x1ee   :  { %1309 = vst.msk [vmem:[%s3171_s5 + $0x28] sm:$0xff] %vm81_vm0, %v1267_v35  ;;  %v931_v6 = vmul.f32 %v802_v10, %v2973_v48 }
 0x1ef   :  { %v917_v15 = vsel %vm916_vm7, %v1643_v42, %v913_v20 }
 0x1f0   :  { %v1265_v26 = vpop.permute.xlu1 %1264  ;;  %947 = vst.msk [vmem:[%s3172_s10 + $0x38] sm:$0xff] %vm81_vm0, %v931_v6  ;;  %v922_v16 = vsel %vm919_vm8, %v921_v11, %v917_v15 }
 0x1f1   :  { %1308 = vst.msk [vmem:[%s3171_s5 + $0x20] sm:$0xff] %vm81_vm0, %v1265_v26  ;;  %v939_v8 = vmul.f32 %v922_v16, %v2996_v46 }
 0x1f3   :  { %v1281_v13 = vpop.permute.xlu0 %1280  ;;  %955 = vst.msk [vmem:[%s3172_s10 + $0x78] sm:$0xff] %vm81_vm0, %v939_v8 }
 0x1f4   :  { %1316 = vst.msk [vmem:[%s3171_s5 + $0x60] sm:$0xff] %vm81_vm0, %v1281_v13 }
 0x1f8   :  { %v1377_v45 = vpop.permute.xlu1 %1376 }
 0x1f9   :  { %1412 = vst.msk [vmem:[%s3173_s6 + $0x60] sm:$0xff] %vm81_vm0, %v1377_v45 }
 0x1fb   :  { %v1363_v22 = vpop.permute.xlu0 %1362 }
 0x1fc   :  { %1405 = vst.msk [vmem:[%s3173_s6 + $0x28] sm:$0xff] %vm81_vm0, %v1363_v22 }
 0x205   :  { %v1269_v48 = vpop.permute.xlu0 %1268 }
 0x206   :  { %1310 = vst.msk [vmem:[%s3171_s5 + $0x30] sm:$0xff] %vm81_vm0, %v1269_v48 }
 0x208   :  { %v1283_v49 = vpop.permute.xlu1 %1282 }
 0x209   :  { %1317 = vst.msk [vmem:[%s3171_s5 + $0x68] sm:$0xff] %vm81_vm0, %v1283_v49 }
 0x20d   :  { %v1285_v23 = vpop.permute.xlu2 %1284 }
 0x20e   :  { %1318 = vst.msk [vmem:[%s3171_s5 + $0x70] sm:$0xff] %vm81_vm0, %v1285_v23 }
 0x210   :  { %v1365_v24 = vpop.permute.xlu1 %1364 }
 0x211   :  { %1406 = vst.msk [vmem:[%s3173_s6 + $0x30] sm:$0xff] %vm81_vm0, %v1365_v24 }
 0x215   :  { %v1367_v46 = vpop.permute.xlu2 %1366 }
 0x216   :  { %1407 = vst.msk [vmem:[%s3173_s6 + $0x38] sm:$0xff] %vm81_vm0, %v1367_v46 }
 0x21d   :  { %v1379_v25 = vpop.permute.xlu2 %1378 }
 0x21e   :  { %1413 = vst.msk [vmem:[%s3173_s6 + $0x68] sm:$0xff] %vm81_vm0, %v1379_v25 }
 0x225   :  { %v1287_v36 = vpop.permute.xlu0 %1286 }
 0x226   :  { %1319 = vst.msk [vmem:[%s3171_s5 + $0x78] sm:$0xff] %vm81_vm0, %v1287_v36 }
 0x228   :  { %v1271_v60 = vpop.permute.xlu1 %1270 }
 0x229   :  { %1311 = vst.msk [vmem:[%s3171_s5 + $0x38] sm:$0xff] %vm81_vm0, %v1271_v60 }
 0x22d   :  { %v1381_v27 = vpop.permute.xlu0 %1380 }
 0x22e   :  { %1414 = vst.msk [vmem:[%s3173_s6 + $0x70] sm:$0xff] %vm81_vm0, %v1381_v27 }
 0x230   :  { %v1383_v38 = vpop.permute.xlu1 %1382 }
 0x231   :  { %1415 = vst.msk [vmem:[%s3173_s6 + $0x78] sm:$0xff] %vm81_vm0, %v1383_v38 }

</bundles_post_ra>
